<compile_context>
chip_gen: v7x
topology: tpu7x:2x2x1
jax: 0.10.0
libtpu: 0.0.40
codegen_flags: <defaults>
</compile_context>

<pallas_src>
import functools

import numpy as np
import jax
import jax.numpy as jnp
from jax import lax
from jax.experimental import pallas as pl
from jax.experimental.pallas import tpu as pltpu

ALPHA = 0.3
DATA_RANGE = 1.0
KERNEL_SIZE = 11
KERNEL_SIGMA = 1.5
K1 = 0.01
K2 = 0.03


def _round_up(x: int, m: int) -> int:
    return (x + m - 1) // m * m


def _gaussian_1d(kernel_size: int, sigma: float) -> np.ndarray:
    # outer(g, g) of this normalized 1D filter equals piq's 2D gaussian_filter.
    coords = np.arange(kernel_size, dtype=np.float64) - (kernel_size - 1) / 2.0
    g = np.exp(-(coords ** 2) / (2.0 * sigma ** 2))
    return (g / g.sum()).astype(np.float32)


def _banded_valid_conv_matrix(n_in: int, n_out_pad: int, g: np.ndarray) -> np.ndarray:
    """(n_out_pad, n_in) banded matrix; rows >= n_out (= n_in - k + 1) are zero padding."""
    k = g.shape[0]
    n_out = n_in - k + 1
    m = np.zeros((n_out_pad, n_in), dtype=np.float32)
    for o in range(n_out):
        m[o, o:o + k] = g
    return m


def _ms_ssim_kernel(gw_t_ref, gh_ref, mask_ref, pred_ref, targ_ref,
                    mse_ref, ssim_ref, *, cb, h, w, ho, wo, wo_pad):
    # One (Cb, H, W) channel block per grid step.
    num_planes = 5 * cb

    x = jnp.clip(pred_ref[0].astype(jnp.float32), 0.0, 1.0).reshape(cb * h, w)
    y = jnp.clip(targ_ref[0].astype(jnp.float32), 0.0, 1.0).reshape(cb * h, w)

    # ---- MSE partial (mean over this block; equal block sizes => global mean later) ----
    diff = x - y
    mse_block = jnp.sum(diff * diff) / float(cb * h * w)

    # ---- SSIM (piq) partial ----
    if DATA_RANGE != 1.0:           # compile-time guard: skip the *1.0 scaling
        x = x * (1.0 / DATA_RANGE)
        y = y * (1.0 / DATA_RANGE)

    # Separable 11x11 Gaussian "valid" conv of the five statistics planes.
    # W-pass: one MXU matmul over all 5*Cb planes stacked along rows.
    stats = jnp.concatenate([x, y, x * x, y * y, x * y], axis=0)      # (5*Cb*H, W)
    t = jnp.dot(stats, gw_t_ref[...],
                preferred_element_type=jnp.float32,
                precision=lax.Precision.HIGHEST)                       # (5*Cb*H, Wo_pad)

    # H-pass: lane-concat the 5*Cb row-blocks (each 128-aligned in lanes) and
    # run one wide MXU matmul.
    t_wide = jnp.concatenate(
        [t[i * h:(i + 1) * h, :] for i in range(num_planes)], axis=1)  # (H, 5*Cb*Wo_pad)
    conv = jnp.dot(gh_ref[...], t_wide,
                   preferred_element_type=jnp.float32,
                   precision=lax.Precision.HIGHEST)                    # (Ho_pad, 5*Cb*Wo_pad)

    cw = cb * wo_pad                                                   # lanes per stat group
    mu_x = conv[:, 0 * cw:1 * cw]
    mu_y = conv[:, 1 * cw:2 * cw]
    e_xx = conv[:, 2 * cw:3 * cw]
    e_yy = conv[:, 3 * cw:4 * cw]
    e_xy = conv[:, 4 * cw:5 * cw]

    mu_xx = mu_x * mu_x
    mu_yy = mu_y * mu_y
    mu_xy = mu_x * mu_y
    sigma_xx = e_xx - mu_xx
    sigma_yy = e_yy - mu_yy
    sigma_xy = e_xy - mu_xy

    c1 = K1 * K1
    c2 = K2 * K2
    # Fused single division (luminance * contrast-structure).
    num = (2.0 * mu_xy + c1) * (2.0 * sigma_xy + c2)
    den = (mu_xx + mu_yy + c1) * (sigma_xx + sigma_yy + c2)
    ss = num / den                                                     # (Ho_pad, Cb*Wo_pad)

    # Masked mean over the valid Ho x Wo region of every channel (the padded
    # region of the map evaluates to exactly 1 and must be excluded).
    mask = mask_ref[...]                                               # (Ho_pad, Wo_pad)
    if cb > 1:
        mask = jnp.concatenate([mask] * cb, axis=1)                    # (Ho_pad, Cb*Wo_pad)
    ssim_block = jnp.sum(ss * mask) / float(cb * ho * wo)

    # Lane-dense (128-wide) partial outputs; wrapper reads lane 0.
    mse_ref[...] = jnp.zeros((1, 1, 1, 128), jnp.float32) + mse_block
    ssim_ref[...] = jnp.zeros((1, 1, 1, 128), jnp.float32) + ssim_block


def _vmem_limit_bytes() -> int:
    # Generation-aware VMEM budget (v5e/v6e: 128 MiB physical, v7x: 64 MiB).
    try:
        cap = int(pltpu.get_tpu_info().vmem_capacity_bytes)
        return min(cap * 3 // 4, 100 * 1024 * 1024)
    except Exception:
        return 48 * 1024 * 1024   # conservative: fits every generation


def _estimate_kernel_vmem(cb, h, w, ho_pad, wo_pad, in_bytes) -> int:
    s = 5 * cb
    f32 = 4
    est = 0
    est += 2 * 2 * cb * h * w * in_bytes                              # pred+targ blocks, dbl-buffered
    est += 2 * (w * wo_pad + ho_pad * h + ho_pad * wo_pad) * f32      # constant operands, dbl-buffered
    est += 2 * cb * h * w * f32                                       # clipped x, y
    est += s * h * w * f32                                            # stacked stats
    est += 2 * s * h * wo_pad * f32                                   # W-pass output + lane-concat copy
    est += ho_pad * s * wo_pad * f32                                  # H-pass output
    est += 6 * ho_pad * cb * wo_pad * f32                             # SSIM elementwise temporaries
    return est


def _choose_channel_block(n, c, h, w, ho_pad, wo_pad, in_bytes, vmem_limit) -> int:
    budget = max(vmem_limit // 2, 8 * 1024 * 1024)
    divisors = [d for d in range(1, c + 1) if c % d == 0 and d <= 8]
    cb = 1
    for d in divisors:
        if _estimate_kernel_vmem(d, h, w, ho_pad, wo_pad, in_bytes) <= budget:
            cb = d
    # Keep >= 2 grid steps so both v7x TensorCores get work (no-op on v5e/v6e).
    if n * (c // cb) < 2:
        smaller = [d for d in divisors if d < cb and n * (c // d) >= 2]
        if smaller:
            cb = smaller[-1]
    return cb


def ms_ssim_loss(prediction: jax.Array, target: jax.Array) -> jax.Array:
    assert prediction.shape == target.shape and prediction.ndim == 4
    N, C, H, W = prediction.shape
    assert H >= KERNEL_SIZE and W >= KERNEL_SIZE, "spatial dims must be >= 11 for SSIM"
    Ho = H - KERNEL_SIZE + 1
    Wo = W - KERNEL_SIZE + 1
    Ho_pad = _round_up(Ho, 8)      # sublane-aligned H-pass output
    Wo_pad = _round_up(Wo, 128)    # lane-aligned W-pass output

    g1 = _gaussian_1d(KERNEL_SIZE, KERNEL_SIGMA)
    gw_t = jnp.asarray(_banded_valid_conv_matrix(W, Wo_pad, g1).T)    # (W, Wo_pad), zero cols >= Wo
    gh = jnp.asarray(_banded_valid_conv_matrix(H, Ho_pad, g1))        # (Ho_pad, H), zero rows >= Ho
    mask_np = np.zeros((Ho_pad, Wo_pad), dtype=np.float32)
    mask_np[:Ho, :Wo] = 1.0
    mask = jnp.asarray(mask_np)

    vmem_limit = _vmem_limit_bytes()
    in_bytes = prediction.dtype.itemsize
    Cb = _choose_channel_block(N, C, H, W, Ho_pad, Wo_pad, in_bytes, vmem_limit)
    CB = C // Cb

    kernel = functools.partial(_ms_ssim_kernel, cb=Cb, h=H, w=W,
                               ho=Ho, wo=Wo, wo_pad=Wo_pad)

    part_shape = jax.ShapeDtypeStruct((N, CB, 1, 128), jnp.float32)

    mse_parts, ssim_parts = pl.pallas_call(
        kernel,
        out_shape=(part_shape, part_shape),
        grid_spec=pltpu.PrefetchScalarGridSpec(
            num_scalar_prefetch=0,
            grid=(N, CB),
            in_specs=[
                pl.BlockSpec((W, Wo_pad), lambda n, c: (0, 0)),        # gw_t (constant)
                pl.BlockSpec((Ho_pad, H), lambda n, c: (0, 0)),        # gh   (constant)
                pl.BlockSpec((Ho_pad, Wo_pad), lambda n, c: (0, 0)),   # valid-region mask (constant)
                pl.BlockSpec((1, Cb, H, W), lambda n, c: (n, c, 0, 0)),
                pl.BlockSpec((1, Cb, H, W), lambda n, c: (n, c, 0, 0)),
            ],
            out_specs=(
                pl.BlockSpec((1, 1, 1, 128), lambda n, c: (n, c, 0, 0)),
                pl.BlockSpec((1, 1, 1, 128), lambda n, c: (n, c, 0, 0)),
            ),
        ),
        compiler_params=pltpu.CompilerParams(
            dimension_semantics=("parallel", "parallel"),
            vmem_limit_bytes=vmem_limit,
        ),
    )(gw_t, gh, mask, prediction, target)

    # All blocks have identical element counts, so the mean of per-block means
    # equals the global mean (matches nn.MSELoss and piq.SSIMLoss 'mean' reduction).
    mse = jnp.mean(mse_parts[:, :, 0, 0])
    ssim_mean = jnp.mean(ssim_parts[:, :, 0, 0])
    ssim_loss = 1.0 - ssim_mean
    return ALPHA * mse + (1.0 - ALPHA) * ssim_loss


if __name__ == "__main__":
    key = jax.random.PRNGKey(0)
    kp, kt = jax.random.split(key)
    # Values deliberately outside [0, 1] to exercise the clamp.
    prediction = jax.random.uniform(kp, (2, 4, 16, 16), dtype=jnp.float32,
                                    minval=-0.2, maxval=1.2)
    target = jax.random.uniform(kt, (2, 4, 16, 16), dtype=jnp.float32,
                                minval=-0.2, maxval=1.2)

    loss = jax.jit(ms_ssim_loss)(prediction, target)
    jax.block_until_ready(loss)
    print("KERNEL_OK")
</pallas_src>

<mosaic_0001>
module attributes {stable_mosaic.version = 11 : i64} {
  func.func @_ms_ssim_kernel(%arg0: i32, %arg1: i32, %arg2: memref<16x128xf32, #tpu.memory_space<vmem>>, %arg3: memref<8x16xf32, #tpu.memory_space<vmem>>, %arg4: memref<8x128xf32, #tpu.memory_space<vmem>>, %arg5: memref<1x4x16x16xf32, #tpu.memory_space<vmem>>, %arg6: memref<1x4x16x16xf32, #tpu.memory_space<vmem>>, %arg7: memref<1x1x1x128xf32, #tpu.memory_space<vmem>>, %arg8: memref<1x1x1x128xf32, #tpu.memory_space<vmem>>) attributes {dimension_semantics = [#tpu.dimension_semantics<parallel>, #tpu.dimension_semantics<parallel>], iteration_bounds = array<i64: 2, 1>, scalar_prefetch = 0 : i64, scratch_operands = 0 : i64, tpu.core_type = #tpu.core_type<tc>, window_params = [{pipeline_mode = #tpu.pipeline_mode<synchronous>, transform_indices = @transform_0, window_bounds = array<i64: 16, 128>}, {pipeline_mode = #tpu.pipeline_mode<synchronous>, transform_indices = @transform_1, window_bounds = array<i64: 8, 16>}, {pipeline_mode = #tpu.pipeline_mode<synchronous>, transform_indices = @transform_2, window_bounds = array<i64: 8, 128>}, {transform_indices = @transform_3, window_bounds = array<i64: 1, 4, 16, 16>}, {transform_indices = @transform_4, window_bounds = array<i64: 1, 4, 16, 16>}, {transform_indices = @transform_5, window_bounds = array<i64: 1, 1, 1, 128>}, {transform_indices = @transform_6, window_bounds = array<i64: 1, 1, 1, 128>}]} {
    %c0 = arith.constant 0 : index
    %c0_0 = arith.constant 0 : index
    %c0_1 = arith.constant 0 : index
    %c0_2 = arith.constant 0 : index
    %0 = vector.load %arg5[%c0, %c0_0, %c0_1, %c0_2] : memref<1x4x16x16xf32, #tpu.memory_space<vmem>>, vector<1x4x16x16xf32>
    %1 = vector.shape_cast %0 : vector<1x4x16x16xf32> to vector<4x16x16xf32>
    %cst = arith.constant 0.000000e+00 : f32
    %cst_3 = arith.constant 1.000000e+00 : f32
    %2 = vector.broadcast %cst : f32 to vector<4x16x16xf32>
    %3 = arith.maximumf %2, %1 : vector<4x16x16xf32>
    %4 = vector.broadcast %cst_3 : f32 to vector<4x16x16xf32>
    %5 = arith.minimumf %4, %3 : vector<4x16x16xf32>
    %6 = vector.shape_cast %5 : vector<4x16x16xf32> to vector<64x16xf32>
    %c0_4 = arith.constant 0 : index
    %c0_5 = arith.constant 0 : index
    %c0_6 = arith.constant 0 : index
    %c0_7 = arith.constant 0 : index
    %7 = vector.load %arg6[%c0_4, %c0_5, %c0_6, %c0_7] : memref<1x4x16x16xf32, #tpu.memory_space<vmem>>, vector<1x4x16x16xf32>
    %8 = vector.shape_cast %7 : vector<1x4x16x16xf32> to vector<4x16x16xf32>
    %cst_8 = arith.constant 0.000000e+00 : f32
    %cst_9 = arith.constant 1.000000e+00 : f32
    %9 = vector.broadcast %cst_8 : f32 to vector<4x16x16xf32>
    %10 = arith.maximumf %9, %8 : vector<4x16x16xf32>
    %11 = vector.broadcast %cst_9 : f32 to vector<4x16x16xf32>
    %12 = arith.minimumf %11, %10 : vector<4x16x16xf32>
    %13 = vector.shape_cast %12 : vector<4x16x16xf32> to vector<64x16xf32>
    %14 = arith.subf %6, %13 : vector<64x16xf32>
    %15 = arith.mulf %14, %14 : vector<64x16xf32>
    %16 = vector.shape_cast %15 : vector<64x16xf32> to vector<1x64x16xf32>
    %cst_10 = arith.constant dense<0.000000e+00> : vector<1xf32>
    %17 = vector.multi_reduction <add>, %16, %cst_10 [1, 2] : vector<1x64x16xf32> to vector<1xf32>
    %18 = vector.shape_cast %17 : vector<1xf32> to vector<1x1x1xf32>
    %19 = vector.extract %18[0, 0, 0] : f32 from vector<1x1x1xf32>
    %cst_11 = arith.constant 1.024000e+03 : f32
    %20 = arith.divf %19, %cst_11 : f32
    %21 = arith.mulf %6, %6 : vector<64x16xf32>
    %22 = arith.mulf %13, %13 : vector<64x16xf32>
    %23 = arith.mulf %6, %13 : vector<64x16xf32>
    %24 = tpu.concatenate %6, %13, %21, %22, %23 in 0 : vector<64x16xf32>, vector<64x16xf32>, vector<64x16xf32>, vector<64x16xf32>, vector<64x16xf32> -> vector<320x16xf32>
    %c0_12 = arith.constant 0 : index
    %c0_13 = arith.constant 0 : index
    %25 = vector.load %arg2[%c0_12, %c0_13] : memref<16x128xf32, #tpu.memory_space<vmem>>, vector<16x128xf32>
    %cst_14 = arith.constant dense<0.000000e+00> : vector<320x128xf32>
    %26 = tpu.matmul %24, %25, %cst_14 {dimension_numbers = #tpu.dot_dimension_numbers<[1], [0], [0], [1], [0, 0, 1, 1], [], []>, precision = #tpu.contract_precision<fp32>} : vector<320x16xf32>, vector<16x128xf32>, vector<320x128xf32> -> vector<320x128xf32>
    %27 = vector.extract_strided_slice %26 {offsets = [0, 0], sizes = [16, 128], strides = [1, 1]} : vector<320x128xf32> to vector<16x128xf32>
    %28 = vector.extract_strided_slice %26 {offsets = [16, 0], sizes = [16, 128], strides = [1, 1]} : vector<320x128xf32> to vector<16x128xf32>
    %29 = vector.extract_strided_slice %26 {offsets = [32, 0], sizes = [16, 128], strides = [1, 1]} : vector<320x128xf32> to vector<16x128xf32>
    %30 = vector.extract_strided_slice %26 {offsets = [48, 0], sizes = [16, 128], strides = [1, 1]} : vector<320x128xf32> to vector<16x128xf32>
    %31 = vector.extract_strided_slice %26 {offsets = [64, 0], sizes = [16, 128], strides = [1, 1]} : vector<320x128xf32> to vector<16x128xf32>
    %32 = vector.extract_strided_slice %26 {offsets = [80, 0], sizes = [16, 128], strides = [1, 1]} : vector<320x128xf32> to vector<16x128xf32>
    %33 = vector.extract_strided_slice %26 {offsets = [96, 0], sizes = [16, 128], strides = [1, 1]} : vector<320x128xf32> to vector<16x128xf32>
    %34 = vector.extract_strided_slice %26 {offsets = [112, 0], sizes = [16, 128], strides = [1, 1]} : vector<320x128xf32> to vector<16x128xf32>
    %35 = vector.extract_strided_slice %26 {offsets = [128, 0], sizes = [16, 128], strides = [1, 1]} : vector<320x128xf32> to vector<16x128xf32>
    %36 = vector.extract_strided_slice %26 {offsets = [144, 0], sizes = [16, 128], strides = [1, 1]} : vector<320x128xf32> to vector<16x128xf32>
    %37 = vector.extract_strided_slice %26 {offsets = [160, 0], sizes = [16, 128], strides = [1, 1]} : vector<320x128xf32> to vector<16x128xf32>
    %38 = vector.extract_strided_slice %26 {offsets = [176, 0], sizes = [16, 128], strides = [1, 1]} : vector<320x128xf32> to vector<16x128xf32>
    %39 = vector.extract_strided_slice %26 {offsets = [192, 0], sizes = [16, 128], strides = [1, 1]} : vector<320x128xf32> to vector<16x128xf32>
    %40 = vector.extract_strided_slice %26 {offsets = [208, 0], sizes = [16, 128], strides = [1, 1]} : vector<320x128xf32> to vector<16x128xf32>
    %41 = vector.extract_strided_slice %26 {offsets = [224, 0], sizes = [16, 128], strides = [1, 1]} : vector<320x128xf32> to vector<16x128xf32>
    %42 = vector.extract_strided_slice %26 {offsets = [240, 0], sizes = [16, 128], strides = [1, 1]} : vector<320x128xf32> to vector<16x128xf32>
    %43 = vector.extract_strided_slice %26 {offsets = [256, 0], sizes = [16, 128], strides = [1, 1]} : vector<320x128xf32> to vector<16x128xf32>
    %44 = vector.extract_strided_slice %26 {offsets = [272, 0], sizes = [16, 128], strides = [1, 1]} : vector<320x128xf32> to vector<16x128xf32>
    %45 = vector.extract_strided_slice %26 {offsets = [288, 0], sizes = [16, 128], strides = [1, 1]} : vector<320x128xf32> to vector<16x128xf32>
    %46 = vector.extract_strided_slice %26 {offsets = [304, 0], sizes = [16, 128], strides = [1, 1]} : vector<320x128xf32> to vector<16x128xf32>
    %47 = tpu.concatenate %27, %28, %29, %30, %31, %32, %33, %34, %35, %36, %37, %38, %39, %40, %41, %42 in 1 : vector<16x128xf32>, vector<16x128xf32>, vector<16x128xf32>, vector<16x128xf32>, vector<16x128xf32>, vector<16x128xf32>, vector<16x128xf32>, vector<16x128xf32>, vector<16x128xf32>, vector<16x128xf32>, vector<16x128xf32>, vector<16x128xf32>, vector<16x128xf32>, vector<16x128xf32>, vector<16x128xf32>, vector<16x128xf32> -> vector<16x2048xf32>
    %48 = tpu.concatenate %43, %44, %45, %46 in 1 : vector<16x128xf32>, vector<16x128xf32>, vector<16x128xf32>, vector<16x128xf32> -> vector<16x512xf32>
    %49 = tpu.concatenate %47, %48 in 1 : vector<16x2048xf32>, vector<16x512xf32> -> vector<16x2560xf32>
    %c0_15 = arith.constant 0 : index
    %c0_16 = arith.constant 0 : index
    %50 = vector.load %arg3[%c0_15, %c0_16] : memref<8x16xf32, #tpu.memory_space<vmem>>, vector<8x16xf32>
    %cst_17 = arith.constant dense<0.000000e+00> : vector<8x2560xf32>
    %51 = tpu.matmul %50, %49, %cst_17 {dimension_numbers = #tpu.dot_dimension_numbers<[1], [0], [0], [1], [0, 0, 1, 1], [], []>, precision = #tpu.contract_precision<fp32>} : vector<8x16xf32>, vector<16x2560xf32>, vector<8x2560xf32> -> vector<8x2560xf32>
    %52 = vector.extract_strided_slice %51 {offsets = [0, 0], sizes = [8, 512], strides = [1, 1]} : vector<8x2560xf32> to vector<8x512xf32>
    %53 = vector.extract_strided_slice %51 {offsets = [0, 512], sizes = [8, 512], strides = [1, 1]} : vector<8x2560xf32> to vector<8x512xf32>
    %54 = vector.extract_strided_slice %51 {offsets = [0, 1024], sizes = [8, 512], strides = [1, 1]} : vector<8x2560xf32> to vector<8x512xf32>
    %55 = vector.extract_strided_slice %51 {offsets = [0, 1536], sizes = [8, 512], strides = [1, 1]} : vector<8x2560xf32> to vector<8x512xf32>
    %56 = vector.extract_strided_slice %51 {offsets = [0, 2048], sizes = [8, 512], strides = [1, 1]} : vector<8x2560xf32> to vector<8x512xf32>
    %57 = arith.mulf %52, %52 : vector<8x512xf32>
    %58 = arith.mulf %53, %53 : vector<8x512xf32>
    %59 = arith.mulf %52, %53 : vector<8x512xf32>
    %60 = arith.subf %54, %57 : vector<8x512xf32>
    %61 = arith.subf %55, %58 : vector<8x512xf32>
    %62 = arith.subf %56, %59 : vector<8x512xf32>
    %cst_18 = arith.constant 2.000000e+00 : f32
    %63 = vector.broadcast %cst_18 : f32 to vector<8x512xf32>
    %64 = arith.mulf %63, %59 : vector<8x512xf32>
    %cst_19 = arith.constant 9.99999974E-5 : f32
    %65 = vector.broadcast %cst_19 : f32 to vector<8x512xf32>
    %66 = arith.addf %64, %65 : vector<8x512xf32>
    %cst_20 = arith.constant 2.000000e+00 : f32
    %67 = vector.broadcast %cst_20 : f32 to vector<8x512xf32>
    %68 = arith.mulf %67, %62 : vector<8x512xf32>
    %cst_21 = arith.constant 8.99999984E-4 : f32
    %69 = vector.broadcast %cst_21 : f32 to vector<8x512xf32>
    %70 = arith.addf %68, %69 : vector<8x512xf32>
    %71 = arith.mulf %66, %70 : vector<8x512xf32>
    %72 = arith.addf %57, %58 : vector<8x512xf32>
    %cst_22 = arith.constant 9.99999974E-5 : f32
    %73 = vector.broadcast %cst_22 : f32 to vector<8x512xf32>
    %74 = arith.addf %72, %73 : vector<8x512xf32>
    %75 = arith.addf %60, %61 : vector<8x512xf32>
    %cst_23 = arith.constant 8.99999984E-4 : f32
    %76 = vector.broadcast %cst_23 : f32 to vector<8x512xf32>
    %77 = arith.addf %75, %76 : vector<8x512xf32>
    %78 = arith.mulf %74, %77 : vector<8x512xf32>
    %79 = arith.divf %71, %78 : vector<8x512xf32>
    %c0_24 = arith.constant 0 : index
    %c0_25 = arith.constant 0 : index
    %80 = vector.load %arg4[%c0_24, %c0_25] : memref<8x128xf32, #tpu.memory_space<vmem>>, vector<8x128xf32>
    %81 = tpu.concatenate %80, %80, %80, %80 in 1 : vector<8x128xf32>, vector<8x128xf32>, vector<8x128xf32>, vector<8x128xf32> -> vector<8x512xf32>
    %82 = arith.mulf %79, %81 : vector<8x512xf32>
    %83 = vector.shape_cast %82 : vector<8x512xf32> to vector<1x8x512xf32>
    %cst_26 = arith.constant dense<0.000000e+00> : vector<1xf32>
    %84 = vector.multi_reduction <add>, %83, %cst_26 [1, 2] : vector<1x8x512xf32> to vector<1xf32>
    %85 = vector.shape_cast %84 : vector<1xf32> to vector<1x1x1xf32>
    %86 = vector.extract %85[0, 0, 0] : f32 from vector<1x1x1xf32>
    %cst_27 = arith.constant 1.440000e+02 : f32
    %87 = arith.divf %86, %cst_27 : f32
    %cst_28 = arith.constant 0.000000e+00 : f32
    %88 = vector.broadcast %cst_28 : f32 to vector<1x1x1x128xf32>
    %89 = vector.broadcast %20 : f32 to vector<1x1x1x128xf32>
    %90 = arith.addf %88, %89 : vector<1x1x1x128xf32>
    %c0_29 = arith.constant 0 : index
    %c0_30 = arith.constant 0 : index
    %c0_31 = arith.constant 0 : index
    %c0_32 = arith.constant 0 : index
    %91 = vector.load %arg7[%c0_29, %c0_30, %c0_31, %c0_32] : memref<1x1x1x128xf32, #tpu.memory_space<vmem>>, vector<1x1x1x128xf32>
    tpu.vector_store %arg7[%c0_29, %c0_30, %c0_31, %c0_32], %90 {strides = array<i32>} : memref<1x1x1x128xf32, #tpu.memory_space<vmem>>, vector<1x1x1x128xf32>,
    %cst_33 = arith.constant 0.000000e+00 : f32
    %92 = vector.broadcast %cst_33 : f32 to vector<1x1x1x128xf32>
    %93 = vector.broadcast %87 : f32 to vector<1x1x1x128xf32>
    %94 = arith.addf %92, %93 : vector<1x1x1x128xf32>
    %c0_34 = arith.constant 0 : index
    %c0_35 = arith.constant 0 : index
    %c0_36 = arith.constant 0 : index
    %c0_37 = arith.constant 0 : index
    %95 = vector.load %arg8[%c0_34, %c0_35, %c0_36, %c0_37] : memref<1x1x1x128xf32, #tpu.memory_space<vmem>>, vector<1x1x1x128xf32>
    tpu.vector_store %arg8[%c0_34, %c0_35, %c0_36, %c0_37], %94 {strides = array<i32>} : memref<1x1x1x128xf32, #tpu.memory_space<vmem>>, vector<1x1x1x128xf32>,
    return
  }
  func.func @transform_0(%arg0: i32, %arg1: i32) -> (i32, i32) {
    %c0_i32 = arith.constant 0 : i32
    %c0_i32_0 = arith.constant 0 : i32
    %c0_i32_1 = arith.constant 0 : i32
    return %c0_i32, %c0_i32_0 : i32, i32
  }
  func.func @transform_1(%arg0: i32, %arg1: i32) -> (i32, i32) {
    %c0_i32 = arith.constant 0 : i32
    %c0_i32_0 = arith.constant 0 : i32
    %c0_i32_1 = arith.constant 0 : i32
    return %c0_i32, %c0_i32_0 : i32, i32
  }
  func.func @transform_2(%arg0: i32, %arg1: i32) -> (i32, i32) {
    %c0_i32 = arith.constant 0 : i32
    %c0_i32_0 = arith.constant 0 : i32
    %c0_i32_1 = arith.constant 0 : i32
    return %c0_i32, %c0_i32_0 : i32, i32
  }
  func.func @transform_3(%arg0: i32, %arg1: i32) -> (i32, i32, i32, i32) {
    %c0_i32 = arith.constant 0 : i32
    %c0_i32_0 = arith.constant 0 : i32
    %c0_i32_1 = arith.constant 0 : i32
    return %arg0, %arg1, %c0_i32, %c0_i32_0 : i32, i32, i32, i32
  }
  func.func @transform_4(%arg0: i32, %arg1: i32) -> (i32, i32, i32, i32) {
    %c0_i32 = arith.constant 0 : i32
    %c0_i32_0 = arith.constant 0 : i32
    %c0_i32_1 = arith.constant 0 : i32
    return %arg0, %arg1, %c0_i32, %c0_i32_0 : i32, i32, i32, i32
  }
  func.func @transform_5(%arg0: i32, %arg1: i32) -> (i32, i32, i32, i32) {
    %c0_i32 = arith.constant 0 : i32
    %c0_i32_0 = arith.constant 0 : i32
    %c0_i32_1 = arith.constant 0 : i32
    return %arg0, %arg1, %c0_i32, %c0_i32_0 : i32, i32, i32, i32
  }
  func.func @transform_6(%arg0: i32, %arg1: i32) -> (i32, i32, i32, i32) {
    %c0_i32 = arith.constant 0 : i32
    %c0_i32_0 = arith.constant 0 : i32
    %c0_i32_1 = arith.constant 0 : i32
    return %arg0, %arg1, %c0_i32, %c0_i32_0 : i32, i32, i32, i32
  }
}

</mosaic_0001>

<bundles_post_ra>
// kernel: ms_ssim_loss.1
= control target key start
LH: loop header
LB: loop body
LE: loop exit
PB: predicated region body
PF: predicated region fallthrough
CT: control target
= control target key end

     0   :  { %12 = vsyncpa [#allocation3], 0  ;;  %s11183_s0 = inlined_call_operand.vmem [shape: f32[16,128], index: 0, kind: input, shape index: {}]   ;;  %s11184_s1 = inlined_call_operand.hbm [shape: f32[8,16], index: 1, kind: input, shape index: {}]   ;;  %s11185_s2 = inlined_call_operand.vmem [shape: f32[8,128], index: 2, kind: input, shape index: {}]   ;;  %s11186_s3 = inlined_call_operand.hbm [shape: f32[2,4,16,16], index: 3, kind: input, shape index: {}]   ;;  %s11187_s4 = inlined_call_operand.hbm [shape: f32[2,4,16,16], index: 4, kind: input, shape index: {}]   ;;  %s11188_s5 = inlined_call_operand.vmem [shape: f32[2,1,1,128], index: 5, kind: output, shape index: {0}]   ;;  %s11189_s6 = inlined_call_operand.vmem [shape: f32[2,1,1,128], index: 6, kind: output, shape index: {1}]  }
   0x1   :  { %13 = vsyncpa [#allocation5], 0 }
   0x2   :  { %15 = vsyncpa [#allocation5 + $0x1], 0  ;;  %s9395_s21 = smov 0   ;;  %s9397_s22 = smov 0  }
   0x3   :  { %s9399_s23 = smov 0   ;;  %s9401_s24 = smov 0  }
   0x4   :  { %s9403_s25 = smov 0   ;;  %s9405_s26 = smov 0  }
   0x5 LB: > { %s33_s27 = sadd.s32 1, %s9348_s25  ;;  %s105_s28 = sadd.s32 1, %s9340_s23  ;;  %s9352_s26 = sphi %s9405_s26, %s21_s26   ;;  %s9348_s25 = sphi %s9403_s25, %s11549_s25   ;;  %s9344_s24 = sphi %s9401_s24, %s11548_s24   ;;  %s9340_s23 = sphi %s9399_s23, %s11547_s23   ;;  %s9336_s22 = sphi %s9397_s22, %s11546_s22   ;;  %s9332_s21 = sphi %s9395_s21, %s11545_s21  }
   0x6   : > { %p35_p0 = scmp.ge.s32.totalorder %s33_s27, 2  ;;  %p112_p1 = scmp.ne.s32.totalorder %s9340_s23, %s9336_s22 }
   0x7   : > { %p113_p2 = scmp.eq.s32.totalorder %s9352_s26, 0  ;;  %p9148_p4 = scmp.lt.s32.totalorder %s9352_s26, 2 }
   0x8   : > { %s11551_s27 = smov (%p35_p0, %s33_s27), 0  ;;  %s243_s30 = sand.u32 1, %s9352_s26  }
   0x9   : > { %p114_p3 = por %p113_p2, %p112_p1  ;;  %s100_s29 = ssub.s32 %s9348_s25, %s11551_s27 }
   0xa   : > { %p103_p5 = scmp.eq.s32.totalorder %s100_s29, 0  ;;  %s245_s7 = sand.u32 1, %s9340_s23  }
   0xb   : > { %s7920_s8 = sshll.u32 %s9348_s25, 10  ;;  %s9441_s10 = sshll.u32 %s245_s7, 6 }
   0xc   : > { %s9439_s9 = scalar_select %p103_p5, %s9340_s23, %s105_s28  }
   0xd   : > { %s9448_s13 = scalar_lea.hbm %s11186_s3, %s7920_s8  ;;  %p9450_p6 = pnand %p9148_p4, %p114_p3 }
   0xe   : > { %s247_s15 = scalar_lea.vmem [#allocation4], %s9441_s10  ;;  %s9457_s17 = scalar_lea.sflag [#allocation5], %s243_s30 }
   0xf   : > { %s257_s16 = sshll.u32 %s247_s15, 4  ;;  %s9210_s18 = scalar_lea.hbm %s9448_s13, 1024  ;;  %s9455_s16 = int_to_ptr.vmem [resolvable:$true] %s257_s16 }
  0x10   : > { %p9211_p7 = scmp.ne.s32.totalorder %s9448_s13, %s9210_s18  ;;  %p9212_p8 = pneg %p9450_p6 }
  0x11   : > { %s9215_s28 = scalar_lea.hbm %s11186_s3, 2048  ;;  %p9216_p11 = scmp.lt.u32.totalorder %s9448_s13, %s11186_s3 }
  0x12   : > { %p9213_p9 = pnand %p9212_p8, %p9211_p7  ;;  %p9217_p12 = scmp.lt.u32.totalorder %s9215_s28, %s9210_s18 }
  0x13   : > { %p9219_p0 = scmp.lt.u32.totalorder %s9210_s18, %s9448_s13 }
  0x14   : > { %p9214_p10 = pneg %p9213_p9  ;;  %p9218_p13 = por %p9217_p12, %p9216_p11 }
  0x16   : > { %p9220_p1 = por %p9219_p0, %p9218_p13 }
  0x18   : > { %p9221_p2 = pnand %p9220_p1, %p9214_p10 }
  0x1a   : > { %9224 = shalt.err (!%p9221_p2)
}
  0x1b   : > { %s9225_s30 = scalar_lea.vmem %s9455_s16, 1024  ;;  %s9354_s11 = smov [#allocation4]  }
  0x1c   : > { %p9226_p3 = scmp.ne.s32.totalorder %s9455_s16, %s9225_s30  ;;  %s9230_s12 = sshll.u32 %s9354_s11, 4  ;;  %s9231_s12 = int_to_ptr.vmem [resolvable:$false] %s9230_s12 }
  0x1d   : > { %s9232_s15 = scalar_lea.vmem %s9231_s12, 2048  ;;  %p9233_p7 = scmp.lt.s32.totalorder %s9455_s16, %s9231_s12 }
  0x1e   : > { %p9228_p4 = pnand %p9226_p3, %p9212_p8  ;;  %p9234_p9 = scmp.lt.s32.totalorder %s9232_s15, %s9225_s30 }
  0x20   : > { %p9229_p5 = pneg %p9228_p4  ;;  %p9235_p11 = por %p9234_p9, %p9233_p7 }
  0x22   : > { %p9236_p12 = pnand %p9235_p11, %p9229_p5 }
  0x24   : > { %9239 = shalt.err (!%p9236_p12)
}
  0x25   : > { %s9355_s18 = smov 128   ;;  %s9356_s19 = smov 8  }
  0x26   : > { %9143 = dma.hbm_to_vmem [thread:$0]  (!%p9450_p6), %s9448_s13, 1024, %s9455_s16, %s9457_s17, %s9355_s18, %s9355_s18, %s9356_s19  }
  0x27   : > { %s9493_s29 = scalar_lea.hbm %s11187_s4, %s7920_s8  ;;  %s271_s7 = scalar_lea.vmem [#allocation6], %s9441_s10 }
  0x28   : > { %s281_s30 = sshll.u32 %s271_s7, 4  ;;  %s11190_s11 = sadd.s32 4294967295, %s9352_s26   ;;  %s9496_s30 = int_to_ptr.vmem [resolvable:$true] %s281_s30 }
  0x29   : > { %p118_p10 = scmp.ne.s32.totalorder %s9336_s22, %s9332_s21  ;;  %p9503_p13 = scmp.eq.s32.totalorder %s11190_s11, 0 }
  0x2a   : > { %p7905_p0 = scmp.ge.s32.totalorder %s9352_s26, 1  ;;  %p213_p1 = scmp.lt.s32.totalorder %s9352_s26, 3 }
  0x2b   : > { %s11315_s12 = scalar_select %p9503_p13, 1, 0 }
  0x2c   : > { %p9511_p2 = por %p9503_p13, %p118_p10  ;;  %p9515_p3 = pnand %p7905_p0, %p213_p1 }
  0x2d   : > { %s9357_s21 = smov [#allocation2]   ;;  %s9240_s16 = scalar_lea.hbm %s9493_s29, 1024 }
  0x2e   : > { %s11316_s8 = scalar_select %p9511_p2, 1, 0 }
  0x2f   : > { %s11317_s10 = scalar_select %p9515_p3, 1, 0 }
  0x30   : > { %s9519_s13 = sshll.u32 %s9357_s21, 4  ;;  %p9241_p5 = scmp.ne.s32.totalorder %s9493_s29, %s9240_s16  ;;  %s230_s13 = int_to_ptr.vmem [resolvable:$true] %s9519_s13 }
  0x31   : > { %s9245_s28 = scalar_lea.hbm %s11187_s4, 2048  ;;  %p9246_p11 = scmp.lt.u32.totalorder %s9493_s29, %s11187_s4 }
  0x32   : > { %p9243_p7 = pnand %p9241_p5, %p9212_p8  ;;  %p9247_p12 = scmp.lt.u32.totalorder %s9245_s28, %s9240_s16 }
  0x33   : > { %p9249_p0 = scmp.lt.u32.totalorder %s9240_s16, %s9493_s29 }
  0x34   : > { %p9244_p9 = pneg %p9243_p7  ;;  %p9248_p10 = por %p9247_p12, %p9246_p11 }
  0x36   : > { %p9250_p1 = por %p9249_p0, %p9248_p10 }
  0x38   : > { %p9251_p2 = pnand %p9250_p1, %p9244_p9 }
  0x3a   : > { %9254 = shalt.err (!%p9251_p2)
}
  0x3b   : > { %s9255_s21 = scalar_lea.vmem %s9496_s30, 1024  ;;  %s9358_s15 = smov [#allocation6]  }
  0x3c   : > { %p9256_p5 = scmp.ne.s32.totalorder %s9496_s30, %s9255_s21  ;;  %s9260_s20 = sshll.u32 %s9358_s15, 4  ;;  %s9261_s20 = int_to_ptr.vmem [resolvable:$false] %s9260_s20 }
  0x3d   : > { %s9262_s11 = scalar_lea.vmem %s9261_s20, 2048  ;;  %p9263_p3 = scmp.lt.s32.totalorder %s9496_s30, %s9261_s20 }
  0x3e   : > { %p9258_p7 = pnand %p9256_p5, %p9212_p8  ;;  %p9264_p11 = scmp.lt.s32.totalorder %s9262_s11, %s9255_s21 }
  0x40   : > { %p9259_p4 = pneg %p9258_p7  ;;  %p9265_p12 = por %p9264_p11, %p9263_p3 }
  0x42   : > { %p9266_p10 = pnand %p9265_p12, %p9259_p4 }
  0x44   : > { %9269 = shalt.err (!%p9266_p10)
}
  0x45   : > { %9146 = dma.hbm_to_vmem [thread:$0]  (!%p9450_p6), %s9493_s29, 1024, %s9496_s30, %s9457_s17, %s9355_s18, %s9355_s18, %s9356_s19  }
  0x46   : > { %p11318_p8 = scmp.ne.s32.totalorder %s11317_s10, 0  ;;  %s9270_s7 = scalar_lea.hbm %s11184_s1, 128 }
  0x47   : > { %p9271_p3 = scmp.ne.s32.totalorder %s11184_s1, %s9270_s7  ;;  %p9277_p1 = scmp.lt.u32.totalorder %s9270_s7, %s11184_s1 }
  0x48   : > { %p11319_p2 = pneg %p11318_p8 }
  0x4a   : > { %p9556_p9 = pnand %p11319_p2, %p9503_p13 }
  0x4c   : > { %p9272_p4 = pneg %p9556_p9 }
  0x4e   : > { %p9273_p6 = pnand %p9272_p4, %p9271_p3 }
  0x50   : > { %p9274_p0 = pneg %p9273_p6 }
  0x52   : > { %p9279_p5 = pnand %p9277_p1, %p9274_p0 }
  0x54   : > { %9282 = shalt.err (!%p9279_p5)
}
  0x55   : > { %s9283_s19 = scalar_lea.vmem %s230_s13, 128  ;;  %p9291_p10 = scmp.lt.s32.totalorder %s230_s13, %s230_s13 }
  0x56   : > { %p9284_p7 = scmp.ne.s32.totalorder %s230_s13, %s9283_s19  ;;  %p9292_p2 = scmp.lt.s32.totalorder %s9283_s19, %s9283_s19 }
  0x58   : > { %p9286_p11 = pnand %p9284_p7, %p9272_p4  ;;  %p9293_p13 = por %p9292_p2, %p9291_p10 }
  0x5a   : > { %p9287_p12 = pneg %p9286_p11 }
  0x5c   : > { %p9294_p8 = pnand %p9293_p13, %p9287_p12 }
  0x5e   : > { %9297 = shalt.err (!%p9294_p8)
}
  0x5f   : > { %9139 = dma.hbm_to_vmem [thread:$0]  (!%p9556_p9), %s11184_s1, 128, %s230_s13, [#allocation3]  }
  0x60   : > { %p11321_p3 = scmp.ne.s32.totalorder %s11317_s10, 0 }
  0x62   : > { %293 = sbr.rel (%p11321_p3) target bundleno = 1510 (0x5e6), region = 40 }
  0x69   : > { %p11322_p6 = scmp.ne.s32.totalorder %s11315_s12, 0 }
  0x6b   : > { %9323 = dma.done.wait (%p11322_p6), [#allocation3], 128  }
  0x6c   : > { %9325 = vsyncadd (%p11322_p6), [#allocation3], 4294967168  ;;  %s11323_s20 = sadd.s32 4294967295, %s9352_s26   ;;  %s301_s28 = sand.u32 1, %s9336_s22  }
  0x6d   : > { %s299_s11 = sand.u32 1, %s11323_s20   ;;  %s9585_s16 = sshll.u32 %s301_s28, 6 }
  0x6e   : > { %s300_s14 = scalar_lea.sflag [#allocation5], %s299_s11  ;;  %s9588_s13 = scalar_lea.vmem [#allocation4], %s9585_s16 }
  0x6f   : > { %p11324_p13 = scmp.ne.s32.totalorder %s11316_s8, 0 }
  0x71   : > { %9327 = dma.done.wait (%p11324_p13), %s300_s14, 2048  }
  0x72   : > { %9329 = vsyncadd (%p11324_p13), %s300_s14, 4294965248  ;;  %v9597_v0 = vld [vmem:[%s11183_s0] sm:$0xff]  ;;  %v9602_v1 = vld [vmem:[%s11183_s0 + $0x8] sm:$0xff]  ;;  %vm431_vm0 = vcmask 130048   ;;  %s9661_s8 = scalar_lea.vmem [#allocation6], %s9585_s16  ;;  %p355_p8 = scmp.lt.s32.totalorder %s9344_s24, 1 }
  0x73   : > { %v367_v2 = vld [vmem:[%s9588_s13] sm:$0xff]  ;;  %v606_v3 = vand.u32 4294901760, %v9597_v0  ;;  %v609_v4 = vand.u32 4294901760, %v9602_v1  ;;  %v368_v6 = vld [vmem:[%s9588_s13 + $0x8] sm:$0xff]  ;;  %v369_v7 = vld [vmem:[%s9588_s13 + $0x10] sm:$0xff] }
  0x74   : > { %v375_v5 = vmax.f32 %v367_v2, 0.0  ;;  %v376_v8 = vmax.f32 %v368_v6, 0.0  ;;  %v377_v12 = vmax.f32 %v369_v7, 0.0  ;;  %v370_v13 = vld [vmem:[%s9588_s13 + $0x18] sm:$0xff]  ;;  %v371_v14 = vld [vmem:[%s9588_s13 + $0x20] sm:$0xff]  ;;  %v372_v25 = vld [vmem:[%s9588_s13 + $0x28] sm:$0xff] }
  0x75   : > { %v9612_v9 = vsub.f32 %v9597_v0, %v606_v3  ;;  %v9617_v10 = vsub.f32 %v9602_v1, %v609_v4  ;;  %v378_v20 = vmax.f32 %v370_v13, 0.0  ;;  %v379_v24 = vmax.f32 %v371_v14, 0.0  ;;  %v373_v26 = vld [vmem:[%s9588_s13 + $0x30] sm:$0xff]  ;;  %v374_v36 = vld [vmem:[%s9588_s13 + $0x38] sm:$0xff]  ;;  %v391_v37 = vld [vmem:[%s9661_s8] sm:$0xff]  ;;  %s11553_s24 = smov (!%p355_p8, %s9344_s24), 1 }
  0x76   : > { %v9619_v11 = vmin.f32 %v375_v5, 1.0  ;;  %v9632_v19 = vmin.f32 %v376_v8, 1.0  ;;  %v9640_v23 = vmin.f32 %v377_v12, 1.0  ;;  %v380_v31 = vmax.f32 %v372_v25, 0.0  ;;  %v392_v46 = vld [vmem:[%s9661_s8 + $0x8] sm:$0xff]  ;;  %v393_v47 = vld [vmem:[%s9661_s8 + $0x10] sm:$0xff]  ;;  %s360_s30 = scalar_lea.vmem %s11188_s5, %s11553_s24  ;;  %s366_s14 = scalar_lea.vmem %s11189_s6, %s11553_s24 }
  0x77   : > { %v1075_v15 = vand.u32 4294901760, %v9612_v9  ;;  %v11196_v16 = vand.u32 4294901760, %v9617_v10  ;;  %v9649_v30 = vmin.f32 %v378_v20, 1.0  ;;  %v9657_v34 = vmin.f32 %v379_v24, 1.0  ;;  %v394_v56 = vld [vmem:[%s9661_s8 + $0x18] sm:$0xff]  ;;  %v395_v57 = vld [vmem:[%s9661_s8 + $0x20] sm:$0xff] }
  0x78   : > { %11325 = vst [vmem:[#allocation9_spill] sm:$0xff] %v9619_v11  ;;  %v9627_v17 = vsel %vm431_vm0, %v9619_v11, 0  ;;  %11326 = vst [vmem:[#allocation10_spill] sm:$0xff] %v9632_v19  ;;  %v9647_v29 = vsel %vm431_vm0, %v9632_v19, 0  ;;  %v9655_v33 = vsel %vm431_vm0, %v9640_v23, 0  ;;  %v381_v35 = vmax.f32 %v373_v26, 0.0 }
  0x79   : > { %v9630_v18 = vand.u32 4294901760, %v9627_v17  ;;  %v1076_v21 = vsub.f32 %v9612_v9, %v1075_v15  ;;  %v1083_v22 = vsub.f32 %v9617_v10, %v11196_v16  ;;  %11327 = vst [vmem:[#allocation11_spill] sm:$0xff] %v9640_v23  ;;  %11328 = vst [vmem:[#allocation12_spill] sm:$0xff] %v9649_v30  ;;  %v9666_v38 = vand.u32 4294901760, %v9647_v29  ;;  %v396_v6 = vld [vmem:[%s9661_s8 + $0x28] sm:$0xff]  ;;  %v397_v8 = vld [vmem:[%s9661_s8 + $0x30] sm:$0xff] }
  0x7a   : > { %11330 = vst [vmem:[#allocation14_spill] sm:$0xff] %v9657_v34  ;;  %v9670_v39 = vand.u32 4294901760, %v9655_v33  ;;  %v9674_v40 = vsel %vm431_vm0, %v9649_v30, 0  ;;  %v9676_v41 = vmin.f32 %v380_v31, 1.0  ;;  %v382_v42 = vmax.f32 %v374_v36, 0.0  ;;  %v398_v26 = vld [vmem:[%s9661_s8 + $0x38] sm:$0xff] }
  0x7b   : > { %8242 = vmatprep.mubr.f32.mxu0 %v9630_v18  ;;  %v1077_v27 = vand.u32 4294901760, %v1076_v21  ;;  %v1084_v28 = vand.u32 4294901760, %v1083_v22  ;;  %11331 = vst [vmem:[#allocation15_spill] sm:$0xff] %v9666_v38  ;;  %v9680_v43 = vsel %vm431_vm0, %v9657_v34, 0  ;;  %v9682_v44 = vmin.f32 %v381_v35, 1.0 }
  0x7c   : > { %11332 = vst [vmem:[#allocation16_spill] sm:$0xff] %v9670_v39  ;;  %11333 = vst [vmem:[#allocation17_spill] sm:$0xff] %v9676_v41  ;;  %v399_v45 = vmax.f32 %v391_v37, 0.0  ;;  %v9688_v48 = vand.u32 4294901760, %v9674_v40  ;;  %v9692_v49 = vand.u32 4294901760, %v9680_v43  ;;  %v9696_v50 = vsel %vm431_vm0, %v9676_v41, 0 }
  0x7d   : > { %v9651_v32 = vpack.c.bf16 %v1084_v28, %v1077_v27  ;;  %11334 = vst [vmem:[#allocation18_spill] sm:$0xff] %v9682_v44  ;;  %v9698_v51 = vmin.f32 %v382_v42, 1.0  ;;  %v400_v52 = vmax.f32 %v392_v46, 0.0  ;;  %v9702_v53 = vsel %vm431_vm0, %v9682_v44, 0 }
  0x7e   : > { %11335 = vst [vmem:[#allocation19_spill] sm:$0xff] %v9688_v48  ;;  %11336 = vst [vmem:[#allocation20_spill] sm:$0xff] %v9692_v49  ;;  %v9704_v54 = vmin.f32 %v399_v45, 1.0  ;;  %v401_v55 = vmax.f32 %v393_v47, 0.0  ;;  %v9710_v58 = vand.u32 4294901760, %v9696_v50  ;;  %v9714_v59 = vand.u32 4294901760, %v9702_v53 }
  0x7f   : > { %11329 = vst [vmem:[#allocation13_spill] sm:$0xff] %v9651_v32  ;;  %8563 = vmatprep.subr.bf16.mxu0 %v9651_v32  ;;  %11337 = vst [vmem:[#allocation21_spill] sm:$0xff] %v9698_v51  ;;  %v9718_v60 = vsel %vm431_vm0, %v9698_v51, 0  ;;  %v9720_v61 = vmin.f32 %v400_v52, 1.0  ;;  %v402_v62 = vmax.f32 %v394_v56, 0.0  ;;  %v403_v5 = vmax.f32 %v395_v57, 0.0 }
  0x80   : > { %8565 = vmatpush3.bf16.msra.mxu0 %v9651_v32  ;;  %11338 = vst [vmem:[#allocation22_spill] sm:$0xff] %v9704_v54  ;;  %11339 = vst [vmem:[#allocation23_spill] sm:$0xff] %v9710_v58  ;;  %v9724_v63 = vsel %vm431_vm0, %v9704_v54, 0  ;;  %v9726_v2 = vmin.f32 %v401_v55, 1.0  ;;  %v8566_v7 = vpack.c.bf16 %v9617_v10, %v9612_v9  ;;  %v9734_v12 = vand.u32 4294901760, %v9718_v60 }
  0x81   : > { %11340 = vst [vmem:[#allocation24_spill] sm:$0xff] %v9714_v59  ;;  %11341 = vst [vmem:[#allocation25_spill] sm:$0xff] %v9720_v61  ;;  %v9738_v13 = vand.u32 4294901760, %v9724_v63  ;;  %v9742_v14 = vsel %vm431_vm0, %v9720_v61, 0  ;;  %v9744_v20 = vmin.f32 %v402_v62, 1.0  ;;  %v404_v21 = vmax.f32 %v396_v6, 0.0 }
  0x82   : > { %11342 = vst [vmem:[#allocation26_spill] sm:$0xff] %v9726_v2  ;;  %11343 = vst [vmem:[#allocation27_spill] sm:$0xff] %v9734_v12  ;;  %8567 = vmatprep.subr.bf16.mxu0 %v8566_v7  ;;  %v9748_v22 = vsel %vm431_vm0, %v9726_v2, 0  ;;  %v9750_v24 = vmin.f32 %v403_v5, 1.0  ;;  %v405_v25 = vmax.f32 %v397_v8, 0.0  ;;  %v9757_v27 = vpack.c.bf16 %v609_v4, %v606_v3 }
  0x83   : > { %8243 = vmatmul.mubr.f32.vlgmr.msra.gmra.mrb[0].mxu0 %v9666_v38  ;;  %11344 = vst [vmem:[#allocation28_spill] sm:$0xff] %v9738_v13  ;;  %11345 = vst [vmem:[#allocation29_spill] sm:$0xff] %v9744_v20  ;;  %v9761_v28 = vand.u32 4294901760, %v9742_v14  ;;  %v9765_v31 = vand.u32 4294901760, %v9748_v22  ;;  %v9769_v35 = vsel %vm431_vm0, %v9744_v20, 0  ;;  %v9771_v36 = vmin.f32 %v404_v21, 1.0 }
  0x84   : > { %8245 = vmatprep.mubr.f32.mxu0 %v9670_v39  ;;  %8569 = vmatpush3.bf16.msra.mxu0 %v8566_v7  ;;  %11346 = vst [vmem:[#allocation30_spill] sm:$0xff] %v9750_v24  ;;  %v406_v0 = vmax.f32 %v398_v26, 0.0  ;;  %v9776_v1 = vsel %vm431_vm0, %v9750_v24, 0  ;;  %v9778_v3 = vmin.f32 %v405_v25, 1.0  ;;  %v9784_v4 = vand.u32 4294901760, %v9769_v35 }
  0x85   : > { %11347 = vst [vmem:[#allocation31_spill] sm:$0xff] %v9761_v28  ;;  %11348 = vst [vmem:[#allocation32_spill] sm:$0xff] %v9765_v31  ;;  %8571 = vmatprep.subr.bf16.mxu0 %v9757_v27  ;;  %8559 = vmatprep.subr.bf16.mxu1 %v9757_v27  ;;  %v9789_v37 = vand.u32 4294901760, %v9776_v1  ;;  %v525_v42 = vsel %vm431_vm0, %v9771_v36, 0  ;;  %v459_v47 = vmul.f32 %v9619_v11, %v9619_v11 }
  0x86   : > { %11349 = vst [vmem:[#allocation33_spill] sm:$0xff] %v9771_v36  ;;  %11350 = vst [vmem:[#allocation34_spill] sm:$0xff] %v9778_v3  ;;  %8561 = vmatpush3.bf16.msra.mxu1 %v9757_v27  ;;  %v9793_v45 = vmin.f32 %v406_v0, 1.0  ;;  %v528_v46 = vsel %vm431_vm0, %v9778_v3, 0  ;;  %v9800_v52 = vand.u32 4294901760, %v525_v42  ;;  %v460_v57 = vmul.f32 %v9632_v19, %v9632_v19 }
  0x87   : > { %8246 = vmatmul.mubr.f32.gmra.mrb[2].mxu0 %v9688_v48  ;;  %11351 = vst [vmem:[#allocation35_spill] sm:$0xff] %v9784_v4  ;;  %8822 = vmatprep.subr.bf16.mxu1 %v9651_v32  ;;  %11352 = vst [vmem:[#allocation36_spill] sm:$0xff] %v9789_v37  ;;  %v9803_v55 = vand.u32 4294901760, %v528_v46  ;;  %v534_v62 = vsel %vm431_vm0, %v459_v47, 0  ;;  %v461_v5 = vmul.f32 %v9640_v23, %v9640_v23  ;;  %v11361_v32 = vand.u32 4294901760, %v9617_v10 }
  0x88   : > { %8248 = vmatprep.mubr.f32.mxu0 %v9692_v49  ;;  %11353 = vst [vmem:[#allocation37_spill] sm:$0xff] %v9793_v45  ;;  %11354 = vst [vmem:[#allocation38_spill] sm:$0xff] %v9800_v52  ;;  %v531_v56 = vsel %vm431_vm0, %v9793_v45, 0  ;;  %v9816_v7 = vand.u32 4294901760, %v534_v62  ;;  %v537_v8 = vsel %vm431_vm0, %v460_v57, 0  ;;  %v462_v21 = vmul.f32 %v9649_v30, %v9649_v30 }
  0x89   : > { %11355 = vst [vmem:[#allocation39_spill] sm:$0xff] %v9803_v55  ;;  %v9813_v6 = vand.u32 4294901760, %v531_v56  ;;  %v540_v25 = vsel %vm431_vm0, %v461_v5, 0  ;;  %v9823_v26 = vand.u32 4294901760, %v537_v8  ;;  %v9835_v57 = vsub.f32 %v9627_v17, %v9630_v18 }
  0x8a   : > { %11357 = vst [vmem:[#allocation41_spill] sm:$0xff] %v9816_v7  ;;  %v9826_v0 = vand.u32 4294901760, %v540_v25  ;;  %v543_v47 = vsel %vm431_vm0, %v462_v21, 0  ;;  %v9839_v5 = vsub.f32 %v9647_v29, %v9666_v38  ;;  %v9845_v21 = vsub.f32 %v9655_v33, %v9670_v39 }
  0x8b   : > { %8249 = vmatmul.mubr.f32.gmra.mrb[4].mxu0 %v9710_v58  ;;  %11356 = vst [vmem:[#allocation40_spill] sm:$0xff] %v9813_v6  ;;  %11358 = vst [vmem:[#allocation42_spill] sm:$0xff] %v9823_v26  ;;  %v9830_v16 = vand.u32 4294901760, %v543_v47  ;;  %v9851_v30 = vpack.c.bf16 %v11361_v32, %v1075_v15  ;;  %v9856_v17 = vsub.f32 %v9674_v40, %v9688_v48 }
  0x8c   : > { %8251 = vmatprep.mubr.f32.mxu0 %v9714_v59  ;;  %11359 = vst [vmem:[#allocation43_spill] sm:$0xff] %v9826_v0  ;;  %v9861_v29 = vsub.f32 %v9680_v43, %v9692_v49  ;;  %v9868_v9 = vsub.f32 %v9696_v50, %v9710_v58  ;;  %v9873_v10 = vsub.f32 %v9702_v53, %v9714_v59 }
  0x8d   : > { %11360 = vst [vmem:[#allocation44_spill] sm:$0xff] %v9830_v16  ;;  %v9878_v15 = vsub.f32 %v9718_v60, %v9734_v12  ;;  %v9883_v32 = vsub.f32 %v9724_v63, %v9738_v13  ;;  %v9888_v33 = vsub.f32 %v9742_v14, %v9761_v28  ;;  %v9893_v40 = vsub.f32 %v9748_v22, %v9765_v31 }
  0x8e   : > { %v9898_v43 = vsub.f32 %v9769_v35, %v9784_v4  ;;  %v9903_v50 = vsub.f32 %v9776_v1, %v9789_v37  ;;  %v9907_v53 = vsub.f32 %v525_v42, %v9800_v52  ;;  %v9911_v60 = vsub.f32 %v528_v46, %v9803_v55 }
  0x8f   : > { %8252 = vmatmul.mubr.f32.gmra.mrb[6].mxu0 %v9734_v12  ;;  %v463_v63 = vmul.f32 %v9657_v34, %v9657_v34  ;;  %v9917_v14 = vsub.f32 %v531_v56, %v9813_v6  ;;  %v9921_v22 = vsub.f32 %v534_v62, %v9816_v7  ;;  %v464_v35 = vmul.f32 %v9676_v41, %v9676_v41 }
  0x90   : > { %8254 = vmatprep.mubr.f32.mxu0 %v9738_v13  ;;  %v465_v42 = vmul.f32 %v9682_v44, %v9682_v44  ;;  %v9930_v46 = vsub.f32 %v537_v8, %v9823_v26  ;;  %v9934_v56 = vsub.f32 %v540_v25, %v9826_v0  ;;  %v9946_v8 = vsub.f32 %v543_v47, %v9830_v16 }
  0x91   : > { %v546_v1 = vsel %vm431_vm0, %v463_v63, 0  ;;  %v466_v63 = vmul.f32 %v9698_v51, %v9698_v51  ;;  %v469_v47 = vmul.f32 %v9726_v2, %v9726_v2 }
  0x92   : > { %v9936_v62 = vand.u32 4294901760, %v546_v1 }
  0x93   : > { %8255 = vmatmul.mubr.f32.gmra.mrb[8].mxu0 %v9761_v28 }
  0x94   : > { %8257 = vmatprep.mubr.f32.mxu0 %v9765_v31  ;;  %v9952_v25 = vsub.f32 %v546_v1, %v9936_v62  ;;  %v564_v31 = vsel %vm431_vm0, %v469_v47, 0  ;;  %v472_v47 = vmul.f32 %v9771_v36, %v9771_v36 }
  0x96   : > { %v573_v48 = vsel %vm431_vm0, %v472_v47, 0 }
  0x97   : > { %8258 = vmatmul.mubr.f32.gmra.mrb[10].mxu0 %v9784_v4  ;;  %v10020_v38 = vand.u32 4294901760, %v573_v48 }
  0x98   : > { %8260 = vmatprep.mubr.f32.mxu0 %v9789_v37 }
  0x99   : > { %11365 = vst [vmem:[#allocation48_spill] sm:$0xff] %v10020_v38 }
  0x9b   : > { %8261 = vmatmul.mubr.f32.gmra.mrb[12].mxu0 %v9800_v52 }
  0x9c   : > { %8263 = vmatprep.mubr.f32.mxu0 %v9803_v55  ;;  %v467_v55 = vmul.f32 %v9704_v54, %v9704_v54 }
  0x9e   : > { %v558_v52 = vsel %vm431_vm0, %v467_v55, 0  ;;  %v470_v55 = vmul.f32 %v9744_v20, %v9744_v20 }
  0x9f   : > { %8264 = vmatmul.mubr.f32.gmra.mrb[14].mxu0 %v9813_v6  ;;  %v552_v6 = vsel %vm431_vm0, %v465_v42, 0  ;;  %v468_v42 = vmul.f32 %v9720_v61, %v9720_v61 }
  0xa0   : > { %8266 = vmatprep.mubr.f32.mxu0 %v9816_v7  ;;  %v549_v7 = vsel %vm431_vm0, %v464_v35, 0  ;;  %v9954_v35 = vand.u32 4294901760, %v552_v6  ;;  %v567_v12 = vsel %vm431_vm0, %v470_v55, 0 }
  0xa1   : > { %v561_v4 = vsel %vm431_vm0, %v468_v42, 0  ;;  %v9990_v42 = vand.u32 4294901760, %v564_v31  ;;  %v10002_v49 = vand.u32 4294901760, %v567_v12 }
  0xa2   : > { %v9970_v1 = vsub.f32 %v552_v6, %v9954_v35  ;;  %v9984_v13 = vand.u32 4294901760, %v561_v4 }
  0xa3   : > { %8267 = vmatmul.mubr.f32.gmra.mrb[16].mxu0 %v9823_v26  ;;  %v9948_v26 = vand.u32 4294901760, %v549_v7  ;;  %11363 = vst [vmem:[#allocation46_spill] sm:$0xff] %v9990_v42  ;;  %11364 = vst [vmem:[#allocation47_spill] sm:$0xff] %v10002_v49 }
  0xa4   : > { %8269 = vmatprep.mubr.f32.mxu0 %v9826_v0  ;;  %v555_v0 = vsel %vm431_vm0, %v466_v63, 0  ;;  %v9972_v63 = vand.u32 4294901760, %v558_v52  ;;  %11362 = vst [vmem:[#allocation45_spill] sm:$0xff] %v9984_v13  ;;  %v10000_v58 = vsub.f32 %v561_v4, %v9984_v13  ;;  %v475_v4 = vmul.f32 %v9704_v54, %v9619_v11 }
  0xa5   : > { %v9966_v37 = vand.u32 4294901760, %v555_v0  ;;  %v10018_v13 = vsub.f32 %v567_v12, %v10002_v49  ;;  %v477_v12 = vmul.f32 %v9726_v2, %v9640_v23  ;;  %v10036_v54 = vsub.f32 %v573_v48, %v10020_v38 }
  0xa6   : > { %v9988_v6 = vsub.f32 %v558_v52, %v9972_v63  ;;  %v10006_v52 = vsub.f32 %v564_v31, %v9990_v42  ;;  %v582_v11 = vsel %vm431_vm0, %v475_v4, 0  ;;  %v11367_v4 = vld [vmem:[#allocation12_spill] sm:$0xff]  ;;  %v479_v48 = vmul.f32 %v9750_v24, %v9657_v34 }
  0xa7   : > { %8270 = vmatmul.mubr.f32.gmra.mrb[18].mxu0 %v9830_v16  ;;  %v9964_v16 = vsub.f32 %v549_v7, %v9948_v26  ;;  %v471_v7 = vmul.f32 %v9750_v24, %v9750_v24  ;;  %v9982_v28 = vsub.f32 %v555_v0, %v9966_v37  ;;  %v473_v0 = vmul.f32 %v9778_v3, %v9778_v3 }
  0xa8   : > { %8306 = vmatprep.mubr.f32.mxu0 %v9835_v57  ;;  %v588_v23 = vsel %vm431_vm0, %v477_v12, 0  ;;  %v480_v12 = vmul.f32 %v9771_v36, %v9676_v41  ;;  %v594_v34 = vsel %vm431_vm0, %v479_v48, 0  ;;  %v482_v48 = vmul.f32 %v9793_v45, %v9698_v51 }
  0xa9   : > { %v570_v59 = vsel %vm431_vm0, %v471_v7, 0  ;;  %v474_v7 = vmul.f32 %v9793_v45, %v9793_v45  ;;  %v576_v39 = vsel %vm431_vm0, %v473_v0, 0  ;;  %v476_v0 = vmul.f32 %v9720_v61, %v9632_v19 }
  0xaa   : > { %v10008_v55 = vand.u32 4294901760, %v570_v59  ;;  %v10026_v47 = vand.u32 4294901760, %v576_v39  ;;  %v478_v61 = vmul.f32 %v9744_v20, %v11367_v4  ;;  %v597_v41 = vsel %vm431_vm0, %v480_v12, 0 }
  0xab   : > { %8307 = vmatmul.mubr.f32.vlgmr.msra.gmra.mrb[0].mxu0 %v9839_v5  ;;  %v579_v42 = vsel %vm431_vm0, %v474_v7, 0  ;;  %v10044_v7 = vand.u32 4294901760, %v582_v11  ;;  %v585_v19 = vsel %vm431_vm0, %v476_v0, 0  ;;  %v10062_v0 = vand.u32 4294901760, %v588_v23 }
  0xac   : > { %8309 = vmatprep.mubr.f32.mxu0 %v9845_v21  ;;  %8573 = vmatpush3.bf16.msra.mxu0 %v9757_v27  ;;  %v10024_v31 = vsub.f32 %v570_v59, %v10008_v55  ;;  %v10038_v49 = vand.u32 4294901760, %v579_v42  ;;  %v10042_v59 = vsub.f32 %v576_v39, %v10026_v47  ;;  %v10056_v38 = vand.u32 4294901760, %v585_v19 }
  0xad   : > { %8575 = vmatprep.subr.bf16.mxu0 %v9851_v30  ;;  %11366 = vst [vmem:[#allocation49_spill] sm:$0xff] %v10044_v7  ;;  %v10060_v39 = vsub.f32 %v582_v11, %v10044_v7  ;;  %11369 = vst [vmem:[#allocation51_spill] sm:$0xff] %v10062_v0  ;;  %v591_v4 = vsel %vm431_vm0, %v478_v61, 0  ;;  %v10078_v11 = vsub.f32 %v588_v23, %v10062_v0  ;;  %v10080_v61 = vand.u32 4294901760, %v594_v34 }
  0xae   : > { %v10054_v2 = vsub.f32 %v579_v42, %v10038_v49  ;;  %11368 = vst [vmem:[#allocation50_spill] sm:$0xff] %v10056_v38  ;;  %v481_v42 = vmul.f32 %v9778_v3, %v9682_v44  ;;  %v10072_v24 = vsub.f32 %v585_v19, %v10056_v38  ;;  %v10074_v20 = vand.u32 4294901760, %v591_v4 }
  0xaf   : > { %8310 = vmatmul.mubr.f32.gmra.mrb[2].mxu0 %v9856_v17  ;;  %11371 = vst [vmem:[#allocation53_spill] sm:$0xff] %v10080_v61  ;;  %v10090_v3 = vand.u32 4294901760, %v597_v41  ;;  %v10094_v23 = vsub.f32 %v594_v34, %v10080_v61  ;;  %v603_v12 = vsel %vm431_vm0, %v482_v48, 0  ;;  %v674_v51 = vand.u32 4294901760, %v9835_v57 }
  0xb0   : > { %8312 = vmatprep.mubr.f32.mxu0 %v9861_v29  ;;  %11370 = vst [vmem:[#allocation52_spill] sm:$0xff] %v10074_v20  ;;  %v600_v44 = vsel %vm431_vm0, %v481_v42, 0  ;;  %v10088_v19 = vsub.f32 %v591_v4, %v10074_v20  ;;  %v684_v42 = vand.u32 4294901760, %v9839_v5  ;;  %v10106_v20 = vand.u32 4294901760, %v603_v12 }
  0xb1   : > { %v10096_v36 = vand.u32 4294901760, %v600_v44  ;;  %v675_v45 = vsub.f32 %v9835_v57, %v674_v51  ;;  %v10104_v4 = vsub.f32 %v597_v41, %v10090_v3  ;;  %v694_v48 = vand.u32 4294901760, %v9845_v21 }
  0xb2   : > { %11373 = vst [vmem:[#allocation55_spill] sm:$0xff] %v10106_v20  ;;  %v685_v34 = vsub.f32 %v9839_v5, %v684_v42  ;;  %v704_v38 = vand.u32 4294901760, %v9856_v17  ;;  %v10118_v41 = vsub.f32 %v603_v12, %v10106_v20  ;;  %v744_v20 = vand.u32 4294901760, %v9878_v15 }
  0xb3   : > { %8313 = vmatmul.mubr.f32.gmra.mrb[4].mxu0 %v9868_v9  ;;  %11372 = vst [vmem:[#allocation54_spill] sm:$0xff] %v10096_v36  ;;  %v10111_v61 = vsub.f32 %v600_v44, %v10096_v36  ;;  %v676_v0 = vand.u32 4294901760, %v675_v45  ;;  %v695_v7 = vsub.f32 %v9845_v21, %v694_v48  ;;  %v714_v44 = vand.u32 4294901760, %v9861_v29  ;;  %v11374_v45 = vld [vmem:[#allocation13_spill] sm:$0xff] }
  0xb4   : > { %8315 = vmatprep.mubr.f32.mxu0 %v9873_v10  ;;  %v686_v57 = vand.u32 4294901760, %v685_v34  ;;  %v705_v5 = vsub.f32 %v9856_v17, %v704_v38  ;;  %v724_v34 = vand.u32 4294901760, %v9868_v9  ;;  %v734_v17 = vand.u32 4294901760, %v9873_v10 }
  0xb5   : > { %8178 = vmatprep.mubr.f32.mxu1 %v676_v0  ;;  %v696_v36 = vand.u32 4294901760, %v695_v7  ;;  %v715_v21 = vsub.f32 %v9861_v29, %v714_v44  ;;  %v754_v29 = vand.u32 4294901760, %v9883_v32 }
  0xb6   : > { %8179 = vmatmul.mubr.f32.vlgmr.msra.gmra.mrb[0].mxu1 %v686_v57  ;;  %v706_v0 = vand.u32 4294901760, %v705_v5  ;;  %v725_v12 = vsub.f32 %v9868_v9, %v724_v34 }
  0xb7   : > { %8316 = vmatmul.mubr.f32.gmra.mrb[6].mxu0 %v9878_v15  ;;  %8823 = vmatpush3.bf16.msra.mxu1 %v11374_v45  ;;  %v716_v57 = vand.u32 4294901760, %v715_v21  ;;  %v735_v45 = vsub.f32 %v9873_v10, %v734_v17 }
  0xb8   : > { %8318 = vmatprep.mubr.f32.mxu0 %v9883_v32  ;;  %8181 = vmatprep.mubr.f32.mxu1 %v696_v36  ;;  %v726_v7 = vand.u32 4294901760, %v725_v12  ;;  %v745_v36 = vsub.f32 %v9878_v15, %v744_v20  ;;  %v774_v15 = vand.u32 4294901760, %v9893_v40 }
  0xb9   : > { %v736_v9 = vand.u32 4294901760, %v735_v45 }
  0xba   : > { %8182 = vmatmul.mubr.f32.gmra.mrb[2].mxu1 %v706_v0  ;;  %v746_v5 = vand.u32 4294901760, %v745_v36  ;;  %v755_v0 = vsub.f32 %v9883_v32, %v754_v29  ;;  %v775_v21 = vsub.f32 %v9893_v40, %v774_v15 }
  0xbb   : > { %8319 = vmatmul.mubr.f32.gmra.mrb[8].mxu0 %v9888_v33  ;;  %8184 = vmatprep.mubr.f32.mxu1 %v716_v57 }
  0xbc   : > { %8321 = vmatprep.mubr.f32.mxu0 %v9893_v40  ;;  %v776_v32 = vand.u32 4294901760, %v775_v21  ;;  %v814_v40 = vand.u32 4294901760, %v9911_v60 }
  0xbe   : > { %8185 = vmatmul.mubr.f32.gmra.mrb[4].mxu1 %v726_v7  ;;  %v815_v45 = vsub.f32 %v9911_v60, %v814_v40 }
  0xbf   : > { %8322 = vmatmul.mubr.f32.gmra.mrb[10].mxu0 %v9898_v43  ;;  %8187 = vmatprep.mubr.f32.mxu1 %v736_v9 }
  0xc0   : > { %8324 = vmatprep.mubr.f32.mxu0 %v9903_v50 }
  0xc2   : > { %8188 = vmatmul.mubr.f32.gmra.mrb[6].mxu1 %v746_v5 }
  0xc3   : > { %8325 = vmatmul.mubr.f32.gmra.mrb[12].mxu0 %v9907_v53 }
  0xc4   : > { %8327 = vmatprep.mubr.f32.mxu0 %v9911_v60  ;;  %v854_v60 = vand.u32 4294901760, %v9934_v56 }
  0xc7   : > { %8328 = vmatmul.mubr.f32.gmra.mrb[14].mxu0 %v9917_v14 }
  0xc8   : > { %8330 = vmatprep.mubr.f32.mxu0 %v9921_v22 }
  0xcb   : > { %8331 = vmatmul.mubr.f32.gmra.mrb[16].mxu0 %v9930_v46 }
  0xcc   : > { %8333 = vmatprep.mubr.f32.mxu0 %v9934_v56 }
  0xcf   : > { %8334 = vmatmul.mubr.f32.gmra.mrb[18].mxu0 %v9946_v8 }
  0xd0   : > { %8336 = vmatprep.mubr.f32.mxu0 %v9952_v25 }
  0xd3   : > { %8337 = vmatmul.mubr.f32.gmra.mrb[20].mxu0 %v9964_v16 }
  0xd4   : > { %8339 = vmatprep.mubr.f32.mxu0 %v9970_v1 }
  0xd7   : > { %8340 = vmatmul.mubr.f32.gmra.mrb[22].mxu0 %v9982_v28 }
  0xd8   : > { %8342 = vmatprep.mubr.f32.mxu0 %v9988_v6 }
  0xdb   : > { %8343 = vmatmul.mubr.f32.gmra.mrb[24].mxu0 %v10000_v58 }
  0xdc   : > { %8345 = vmatprep.mubr.f32.mxu0 %v10006_v52 }
  0xdf   : > { %8346 = vmatmul.mubr.f32.gmra.mrb[26].mxu0 %v10018_v13 }
  0xe0   : > { %8348 = vmatprep.mubr.f32.mxu0 %v10024_v31 }
  0xe3   : > { %8349 = vmatmul.mubr.f32.gmra.mrb[28].mxu0 %v10036_v54 }
  0xe4   : > { %8351 = vmatprep.mubr.f32.mxu0 %v10042_v59 }
  0xe7   : > { %8352 = vmatmul.mubr.f32.gmra.mrb[30].mxu0 %v10054_v2 }
  0xe8   : > { %8354 = vmatprep.mubr.f32.mxu0 %v10060_v39 }
  0xeb   : > { %8355 = vmatmul.mubr.f32.gmra.mrb[32].mxu0 %v10072_v24 }
  0xec   : > { %8357 = vmatprep.mubr.f32.mxu0 %v10078_v11 }
  0xef   : > { %8358 = vmatmul.mubr.f32.gmra.mrb[34].mxu0 %v10088_v19 }
  0xf0   : > { %8360 = vmatprep.mubr.f32.mxu0 %v10094_v23 }
  0xf3   : > { %8361 = vmatmul.mubr.f32.gmra.mrb[36].mxu0 %v10104_v4 }
  0xf4   : > { %8363 = vmatprep.mubr.f32.mxu0 %v10111_v61 }
  0xf7   : > { %8364 = vmatmul.mubr.f32.gmra.mrb[38].mxu0 %v10118_v41 }
  0xf8   : > { %8370 = vmatprep.mubr.f32.mxu0 %v674_v51  ;;  %v764_v51 = vand.u32 4294901760, %v9888_v33 }
  0xfa   : > { %v765_v10 = vsub.f32 %v9888_v33, %v764_v51  ;;  %v804_v33 = vand.u32 4294901760, %v9907_v53 }
  0xfb   : > { %8371 = vmatmul.mubr.f32.vlgmr.msra.gmra.mrb[0].mxu0 %v684_v42  ;;  %v756_v42 = vand.u32 4294901760, %v755_v0 }
  0xfc   : > { %8373 = vmatprep.mubr.f32.mxu0 %v694_v48  ;;  %8577 = vmatpush3.bf16.msra.mxu0 %v9851_v30  ;;  %v784_v48 = vand.u32 4294901760, %v9898_v43  ;;  %v766_v30 = vand.u32 4294901760, %v765_v10  ;;  %v805_v7 = vsub.f32 %v9907_v53, %v804_v33  ;;  %v844_v53 = vand.u32 4294901760, %v9930_v46 }
  0xfd   : > { %8579 = vmatprep.subr.bf16.mxu0 %v9757_v27  ;;  %8190 = vmatprep.mubr.f32.mxu1 %v756_v42  ;;  %v855_v10 = vsub.f32 %v9934_v56, %v854_v60  ;;  %v894_v56 = vand.u32 4294901760, %v9970_v1 }
  0xfe   : > { %8191 = vmatmul.mubr.f32.gmra.mrb[8].mxu1 %v766_v30  ;;  %v785_v12 = vsub.f32 %v9898_v43, %v784_v48  ;;  %v824_v43 = vand.u32 4294901760, %v9917_v14  ;;  %v845_v5 = vsub.f32 %v9930_v46, %v844_v53  ;;  %v884_v46 = vand.u32 4294901760, %v9964_v16 }
  0xff   : > { %8374 = vmatmul.mubr.f32.gmra.mrb[2].mxu0 %v704_v38  ;;  %v794_v38 = vand.u32 4294901760, %v9903_v50  ;;  %8193 = vmatprep.mubr.f32.mxu1 %v776_v32  ;;  %v856_v42 = vand.u32 4294901760, %v855_v10  ;;  %v895_v32 = vsub.f32 %v9970_v1, %v894_v56  ;;  %v934_v1 = vand.u32 4294901760, %v10006_v52 }
 0x100   : > { %8376 = vmatprep.mubr.f32.mxu0 %v714_v44  ;;  %v786_v44 = vand.u32 4294901760, %v785_v12  ;;  %v825_v36 = vsub.f32 %v9917_v14, %v824_v43  ;;  %v864_v14 = vand.u32 4294901760, %v9946_v8  ;;  %v846_v0 = vand.u32 4294901760, %v845_v5 }
 0x101   : > { %v795_v57 = vsub.f32 %v9903_v50, %v794_v38  ;;  %v816_v50 = vand.u32 4294901760, %v815_v45  ;;  %v885_v21 = vsub.f32 %v9964_v16, %v884_v46  ;;  %v924_v16 = vand.u32 4294901760, %v10000_v58 }
 0x102   : > { %8194 = vmatmul.mubr.f32.gmra.mrb[10].mxu1 %v786_v44  ;;  %v896_v44 = vand.u32 4294901760, %v895_v32 }
 0x103   : > { %8377 = vmatmul.mubr.f32.gmra.mrb[4].mxu0 %v724_v34  ;;  %v796_v34 = vand.u32 4294901760, %v795_v57 }
 0x104   : > { %8379 = vmatprep.mubr.f32.mxu0 %v734_v17  ;;  %v806_v17 = vand.u32 4294901760, %v805_v7 }
 0x105   : > { %8196 = vmatprep.mubr.f32.mxu1 %v796_v34 }
 0x106   : > { %8197 = vmatmul.mubr.f32.gmra.mrb[12].mxu1 %v806_v17  ;;  %v935_v17 = vsub.f32 %v10006_v52, %v934_v1  ;;  %v974_v52 = vand.u32 4294901760, %v10042_v59 }
 0x107   : > { %8380 = vmatmul.mubr.f32.gmra.mrb[6].mxu0 %v744_v20  ;;  %v834_v20 = vand.u32 4294901760, %v9921_v22  ;;  %8199 = vmatprep.mubr.f32.mxu1 %v816_v50 }
 0x108   : > { %8382 = vmatprep.mubr.f32.mxu0 %v754_v29  ;;  %v826_v29 = vand.u32 4294901760, %v825_v36  ;;  %v936_v36 = vand.u32 4294901760, %v935_v17  ;;  %v975_v5 = vsub.f32 %v10042_v59, %v974_v52  ;;  %v1014_v59 = vand.u32 4294901760, %v10078_v11  ;;  %v11389_v17 = vld [vmem:[#allocation50_spill] sm:$0xff] }
 0x109   : > { %v835_v9 = vsub.f32 %v9921_v22, %v834_v20  ;;  %v874_v22 = vand.u32 4294901760, %v9952_v25 }
 0x10a   : > { %8200 = vmatmul.mubr.f32.gmra.mrb[14].mxu1 %v826_v29 }
 0x10b   : > { %8383 = vmatmul.mubr.f32.gmra.mrb[8].mxu0 %v764_v51  ;;  %v836_v51 = vand.u32 4294901760, %v835_v9  ;;  %v875_v30 = vsub.f32 %v9952_v25, %v874_v22  ;;  %v914_v25 = vand.u32 4294901760, %v9988_v6 }
 0x10c   : > { %8385 = vmatprep.mubr.f32.mxu0 %v774_v15  ;;  %v865_v15 = vsub.f32 %v9946_v8, %v864_v14  ;;  %v904_v8 = vand.u32 4294901760, %v9982_v28 }
 0x10d   : > { %8202 = vmatprep.mubr.f32.mxu1 %v836_v51  ;;  %v876_v12 = vand.u32 4294901760, %v875_v30  ;;  %v915_v7 = vsub.f32 %v9988_v6, %v914_v25  ;;  %v954_v6 = vand.u32 4294901760, %v10024_v31  ;;  %v976_v51 = vand.u32 4294901760, %v975_v5  ;;  %v11401_v5 = vld [vmem:[#allocation41_spill] sm:$0xff] }
 0x10e   : > { %8203 = vmatmul.mubr.f32.gmra.mrb[16].mxu1 %v846_v0 }
 0x10f   : > { %8386 = vmatmul.mubr.f32.gmra.mrb[10].mxu0 %v784_v48  ;;  %v866_v48 = vand.u32 4294901760, %v865_v15  ;;  %8205 = vmatprep.mubr.f32.mxu1 %v856_v42  ;;  %v916_v34 = vand.u32 4294901760, %v915_v7  ;;  %v955_v50 = vsub.f32 %v10024_v31, %v954_v6  ;;  %v994_v31 = vand.u32 4294901760, %v10060_v39  ;;  %v11382_v7 = vld [vmem:[#allocation23_spill] sm:$0xff] }
 0x110   : > { %8388 = vmatprep.mubr.f32.mxu0 %v794_v38  ;;  %v886_v38 = vand.u32 4294901760, %v885_v21  ;;  %v1015_v42 = vsub.f32 %v10078_v11, %v1014_v59  ;;  %v1054_v11 = vand.u32 4294901760, %v10111_v61 }
 0x111   : > { %v956_v29 = vand.u32 4294901760, %v955_v50  ;;  %v995_v0 = vsub.f32 %v10060_v39, %v994_v31  ;;  %v1034_v39 = vand.u32 4294901760, %v10094_v23  ;;  %v11395_v50 = vld [vmem:[#allocation53_spill] sm:$0xff] }
 0x112   : > { %8206 = vmatmul.mubr.f32.gmra.mrb[18].mxu1 %v866_v48  ;;  %v1016_v48 = vand.u32 4294901760, %v1015_v42 }
 0x113   : > { %8389 = vmatmul.mubr.f32.gmra.mrb[12].mxu0 %v804_v33  ;;  %8208 = vmatprep.mubr.f32.mxu1 %v876_v12  ;;  %v905_v33 = vsub.f32 %v9982_v28, %v904_v8  ;;  %v944_v28 = vand.u32 4294901760, %v10018_v13  ;;  %v996_v15 = vand.u32 4294901760, %v995_v0  ;;  %v1035_v21 = vsub.f32 %v10094_v23, %v1034_v39 }
 0x114   : > { %8391 = vmatprep.mubr.f32.mxu0 %v814_v40  ;;  %v925_v40 = vsub.f32 %v10000_v58, %v924_v16  ;;  %v964_v58 = vand.u32 4294901760, %v10036_v54 }
 0x115   : > { %v906_v57 = vand.u32 4294901760, %v905_v33  ;;  %v945_v45 = vsub.f32 %v10018_v13, %v944_v28  ;;  %v984_v13 = vand.u32 4294901760, %v10054_v2  ;;  %v1036_v12 = vand.u32 4294901760, %v1035_v21 }
 0x116   : > { %8209 = vmatmul.mubr.f32.gmra.mrb[20].mxu1 %v886_v38  ;;  %v1055_v38 = vsub.f32 %v10111_v61, %v1054_v11  ;;  %v11375_v61 = vld [vmem:[#allocation15_spill] sm:$0xff] }
 0x117   : > { %8392 = vmatmul.mubr.f32.gmra.mrb[14].mxu0 %v824_v43  ;;  %8211 = vmatprep.mubr.f32.mxu1 %v896_v44  ;;  %v926_v43 = vand.u32 4294901760, %v925_v40  ;;  %v11379_v44 = vld [vmem:[#allocation19_spill] sm:$0xff]  ;;  %v11383_v40 = vld [vmem:[#allocation48_spill] sm:$0xff] }
 0x118   : > { %8394 = vmatprep.mubr.f32.mxu0 %v834_v20  ;;  %v946_v20 = vand.u32 4294901760, %v945_v45  ;;  %v1056_v23 = vand.u32 4294901760, %v1055_v38  ;;  %v11390_v45 = vld [vmem:[#allocation32_spill] sm:$0xff] }
 0x11a   : > { %8212 = vmatmul.mubr.f32.gmra.mrb[22].mxu1 %v906_v57  ;;  %v11381_v57 = vld [vmem:[#allocation20_spill] sm:$0xff] }
 0x11b   : > { %8395 = vmatmul.mubr.f32.gmra.mrb[16].mxu0 %v844_v53  ;;  %8214 = vmatprep.mubr.f32.mxu1 %v916_v34  ;;  %v965_v53 = vsub.f32 %v10036_v54, %v964_v58  ;;  %v1004_v54 = vand.u32 4294901760, %v10072_v24  ;;  %v11385_v34 = vld [vmem:[#allocation27_spill] sm:$0xff] }
 0x11c   : > { %8397 = vmatprep.mubr.f32.mxu0 %v854_v60  ;;  %v985_v60 = vsub.f32 %v10054_v2, %v984_v13  ;;  %v1024_v2 = vand.u32 4294901760, %v10088_v19 }
 0x11d   : > { %v966_v9 = vand.u32 4294901760, %v965_v53  ;;  %v1005_v10 = vsub.f32 %v10072_v24, %v1004_v54  ;;  %v1044_v24 = vand.u32 4294901760, %v10104_v4  ;;  %v11396_v53 = vld [vmem:[#allocation38_spill] sm:$0xff] }
 0x11e   : > { %8215 = vmatmul.mubr.f32.gmra.mrb[24].mxu1 %v926_v43  ;;  %v11388_v43 = vld [vmem:[#allocation31_spill] sm:$0xff] }
 0x11f   : > { %8398 = vmatmul.mubr.f32.gmra.mrb[18].mxu0 %v864_v14  ;;  %8217 = vmatprep.mubr.f32.mxu1 %v936_v36  ;;  %v986_v14 = vand.u32 4294901760, %v985_v60  ;;  %v11392_v36 = vld [vmem:[#allocation35_spill] sm:$0xff]  ;;  %v11402_v60 = vld [vmem:[#allocation42_spill] sm:$0xff] }
 0x120   : > { %8400 = vmatprep.mubr.f32.mxu0 %v874_v22  ;;  %v1006_v22 = vand.u32 4294901760, %v1005_v10 }
 0x122   : > { %8218 = vmatmul.mubr.f32.gmra.mrb[26].mxu1 %v946_v20  ;;  %v11394_v20 = vld [vmem:[#allocation36_spill] sm:$0xff] }
 0x123   : > { %8401 = vmatmul.mubr.f32.gmra.mrb[20].mxu0 %v884_v46  ;;  %8220 = vmatprep.mubr.f32.mxu1 %v956_v29  ;;  %v1025_v46 = vsub.f32 %v10088_v19, %v1024_v2  ;;  %v1064_v19 = vand.u32 4294901760, %v10118_v41  ;;  %v11398_v29 = vld [vmem:[#allocation54_spill] sm:$0xff] }
 0x124   : > { %8403 = vmatprep.mubr.f32.mxu0 %v894_v56  ;;  %v1045_v56 = vsub.f32 %v10104_v4, %v1044_v24  ;;  %v11376_v4 = vld [vmem:[#allocation45_spill] sm:$0xff] }
 0x125   : > { %v1026_v30 = vand.u32 4294901760, %v1025_v46  ;;  %v1065_v32 = vsub.f32 %v10118_v41, %v1064_v19  ;;  %v11377_v41 = vld [vmem:[#allocation16_spill] sm:$0xff] }
 0x126   : > { %8221 = vmatmul.mubr.f32.gmra.mrb[28].mxu1 %v966_v9  ;;  %v11400_v9 = vld [vmem:[#allocation55_spill] sm:$0xff] }
 0x127   : > { %8404 = vmatmul.mubr.f32.gmra.mrb[22].mxu0 %v904_v8  ;;  %8223 = vmatprep.mubr.f32.mxu1 %v976_v51  ;;  %v1046_v8 = vand.u32 4294901760, %v1045_v56  ;;  %v1066_v33 = vand.u32 4294901760, %v1065_v32  ;;  %v11404_v51 = vld [vmem:[#allocation44_spill] sm:$0xff] }
 0x128   : > { %8406 = vmatprep.mubr.f32.mxu0 %v914_v25  ;;  %v11378_v25 = vld [vmem:[#allocation46_spill] sm:$0xff] }
 0x12a   : > { %8224 = vmatmul.mubr.f32.gmra.mrb[30].mxu1 %v986_v14 }
 0x12b   : > { %8407 = vmatmul.mubr.f32.gmra.mrb[24].mxu0 %v924_v16  ;;  %8226 = vmatprep.mubr.f32.mxu1 %v996_v15  ;;  %v11380_v16 = vld [vmem:[#allocation47_spill] sm:$0xff] }
 0x12c   : > { %8409 = vmatprep.mubr.f32.mxu0 %v934_v1  ;;  %v11384_v1 = vld [vmem:[#allocation24_spill] sm:$0xff] }
 0x12e   : > { %8227 = vmatmul.mubr.f32.gmra.mrb[32].mxu1 %v1006_v22 }
 0x12f   : > { %8410 = vmatmul.mubr.f32.gmra.mrb[26].mxu0 %v944_v28  ;;  %8229 = vmatprep.mubr.f32.mxu1 %v1016_v48  ;;  %v11387_v28 = vld [vmem:[#allocation49_spill] sm:$0xff] }
 0x130   : > { %8412 = vmatprep.mubr.f32.mxu0 %v954_v6  ;;  %v11391_v6 = vld [vmem:[#allocation51_spill] sm:$0xff] }
 0x132   : > { %8230 = vmatmul.mubr.f32.gmra.mrb[34].mxu1 %v1026_v30 }
 0x133   : > { %8413 = vmatmul.mubr.f32.gmra.mrb[28].mxu0 %v964_v58  ;;  %8232 = vmatprep.mubr.f32.mxu1 %v1036_v12  ;;  %v11393_v58 = vld [vmem:[#allocation52_spill] sm:$0xff] }
 0x134   : > { %8415 = vmatprep.mubr.f32.mxu0 %v974_v52  ;;  %v11397_v52 = vld [vmem:[#allocation39_spill] sm:$0xff] }
 0x136   : > { %8233 = vmatmul.mubr.f32.gmra.mrb[36].mxu1 %v1046_v8 }
 0x137   : > { %8416 = vmatmul.mubr.f32.gmra.mrb[30].mxu0 %v984_v13  ;;  %8235 = vmatprep.mubr.f32.mxu1 %v1056_v23  ;;  %v11399_v13 = vld [vmem:[#allocation40_spill] sm:$0xff] }
 0x138   : > { %8418 = vmatprep.mubr.f32.mxu0 %v994_v31  ;;  %v11403_v31 = vld [vmem:[#allocation43_spill] sm:$0xff] }
 0x13a   : > { %8236 = vmatmul.mubr.f32.gmra.mrb[38].mxu1 %v1066_v33 }
 0x13b   : > { %8419 = vmatmul.mubr.f32.gmra.mrb[32].mxu0 %v1004_v54  ;;  %8272 = vmatprep.mubr.f32.mxu1 %v9936_v62 }
 0x13c   : > { %8421 = vmatprep.mubr.f32.mxu0 %v1014_v59 }
 0x13e   : > { %8273 = vmatmul.mubr.f32.vlgmr.msra.gmra.mrb[20].mxu1 %v9948_v26 }
 0x13f   : > { %8422 = vmatmul.mubr.f32.gmra.mrb[34].mxu0 %v1024_v2  ;;  %8275 = vmatprep.mubr.f32.mxu1 %v9954_v35 }
 0x140   : > { %8424 = vmatprep.mubr.f32.mxu0 %v1034_v39 }
 0x142   : > { %8276 = vmatmul.mubr.f32.gmra.mrb[22].mxu1 %v9966_v37 }
 0x143   : > { %8425 = vmatmul.mubr.f32.gmra.mrb[36].mxu0 %v1044_v24  ;;  %8278 = vmatprep.mubr.f32.mxu1 %v9972_v63 }
 0x144   : > { %8427 = vmatprep.mubr.f32.mxu0 %v1054_v11 }
 0x146   : > { %8279 = vmatmul.mubr.f32.gmra.mrb[24].mxu1 %v11376_v4 }
 0x147   : > { %8428 = vmatmul.mubr.f32.gmra.mrb[38].mxu0 %v1064_v19  ;;  %8281 = vmatprep.mubr.f32.mxu1 %v11378_v25 }
 0x148   : > { %8434 = vmatprep.mubr.f32.mxu0 %v9630_v18 }
 0x14a   : > { %8282 = vmatmul.mubr.f32.gmra.mrb[26].mxu1 %v11380_v16 }
 0x14b   : > { %8435 = vmatmul.mubr.f32.vlgmr.msra.gmra.mrb[0].mxu0 %v11375_v61  ;;  %8284 = vmatprep.mubr.f32.mxu1 %v10008_v55 }
 0x14c   : > { %8437 = vmatprep.mubr.f32.mxu0 %v11377_v41  ;;  %8581 = vmatpush3.bf16.msra.mxu0 %v9757_v27  ;;  %v11386_v27 = vld [vmem:[#allocation28_spill] sm:$0xff] }
 0x14e   : > { %8285 = vmatmul.mubr.f32.gmra.mrb[28].mxu1 %v11383_v40 }
 0x14f   : > { %8438 = vmatmul.mubr.f32.gmra.mrb[2].mxu0 %v11379_v44  ;;  %8287 = vmatprep.mubr.f32.mxu1 %v10026_v47 }
 0x150   : > { %8440 = vmatprep.mubr.f32.mxu0 %v11381_v57 }
 0x152   : > { %8288 = vmatmul.mubr.f32.gmra.mrb[30].mxu1 %v10038_v49 }
 0x153   : > { %8441 = vmatmul.mubr.f32.gmra.mrb[4].mxu0 %v11382_v7  ;;  %8290 = vmatprep.mubr.f32.mxu1 %v11387_v28 }
 0x154   : > { %8443 = vmatprep.mubr.f32.mxu0 %v11384_v1 }
 0x156   : > { %8291 = vmatmul.mubr.f32.gmra.mrb[32].mxu1 %v11389_v17 }
 0x157   : > { %8444 = vmatmul.mubr.f32.gmra.mrb[6].mxu0 %v11385_v34  ;;  %8293 = vmatprep.mubr.f32.mxu1 %v11391_v6 }
 0x158   : > { %8446 = vmatprep.mubr.f32.mxu0 %v11386_v27 }
 0x15a   : > { %8294 = vmatmul.mubr.f32.gmra.mrb[34].mxu1 %v11393_v58 }
 0x15b   : > { %8447 = vmatmul.mubr.f32.gmra.mrb[8].mxu0 %v11388_v43  ;;  %8296 = vmatprep.mubr.f32.mxu1 %v11395_v50 }
 0x15c   : > { %8449 = vmatprep.mubr.f32.mxu0 %v11390_v45 }
 0x15e   : > { %8297 = vmatmul.mubr.f32.gmra.mrb[36].mxu1 %v10090_v3 }
 0x15f   : > { %8450 = vmatmul.mubr.f32.gmra.mrb[10].mxu0 %v11392_v36  ;;  %8299 = vmatprep.mubr.f32.mxu1 %v11398_v29 }
 0x160   : > { %8452 = vmatprep.mubr.f32.mxu0 %v11394_v20 }
 0x162   : > { %8300 = vmatmul.mubr.f32.gmra.mrb[38].mxu1 %v11400_v9 }
 0x163   : > { %8453 = vmatmul.mubr.f32.gmra.mrb[12].mxu0 %v11396_v53 }
 0x164   : > { %8455 = vmatprep.mubr.f32.mxu0 %v11397_v52 }
 0x167   : > { %8456 = vmatmul.mubr.f32.gmra.mrb[14].mxu0 %v11399_v13 }
 0x168   : > { %8458 = vmatprep.mubr.f32.mxu0 %v11401_v5 }
 0x16b   : > { %8459 = vmatmul.mubr.f32.gmra.mrb[16].mxu0 %v11402_v60 }
 0x16c   : > { %8461 = vmatprep.mubr.f32.mxu0 %v11403_v31 }
 0x16f   : > { %8462 = vmatmul.mubr.f32.gmra.mrb[18].mxu0 %v11404_v51 }
 0x170   : > { %8464 = vmatprep.mubr.f32.mxu0 %v9936_v62 }
 0x173   : > { %8465 = vmatmul.mubr.f32.gmra.mrb[20].mxu0 %v9948_v26 }
 0x174   : > { %8467 = vmatprep.mubr.f32.mxu0 %v9954_v35 }
 0x177   : > { %8468 = vmatmul.mubr.f32.gmra.mrb[22].mxu0 %v9966_v37 }
 0x178   : > { %8470 = vmatprep.mubr.f32.mxu0 %v9972_v63 }
 0x17b   : > { %8471 = vmatmul.mubr.f32.gmra.mrb[24].mxu0 %v11376_v4 }
 0x17c   : > { %8473 = vmatprep.mubr.f32.mxu0 %v11378_v25 }
 0x17f   : > { %8474 = vmatmul.mubr.f32.gmra.mrb[26].mxu0 %v11380_v16 }
 0x180   : > { %8476 = vmatprep.mubr.f32.mxu0 %v10008_v55 }
 0x183   : > { %8477 = vmatmul.mubr.f32.gmra.mrb[28].mxu0 %v11383_v40 }
 0x184   : > { %8479 = vmatprep.mubr.f32.mxu0 %v10026_v47 }
 0x187   : > { %8480 = vmatmul.mubr.f32.gmra.mrb[30].mxu0 %v10038_v49 }
 0x188   : > { %8482 = vmatprep.mubr.f32.mxu0 %v11387_v28 }
 0x18b   : > { %8483 = vmatmul.mubr.f32.gmra.mrb[32].mxu0 %v11389_v17 }
 0x18c   : > { %8485 = vmatprep.mubr.f32.mxu0 %v11391_v6 }
 0x18f   : > { %8486 = vmatmul.mubr.f32.gmra.mrb[34].mxu0 %v11393_v58 }
 0x190   : > { %8488 = vmatprep.mubr.f32.mxu0 %v11395_v50 }
 0x193   : > { %8489 = vmatmul.mubr.f32.gmra.mrb[36].mxu0 %v10090_v3 }
 0x194   : > { %8491 = vmatprep.mubr.f32.mxu0 %v11398_v29 }
 0x197   : > { %8492 = vmatmul.mubr.f32.gmra.mrb[38].mxu0 %v11400_v9 }
 0x198   : > { %8498 = vmatprep.mubr.f32.mxu0 %v9630_v18  ;;  %v10282_v18 = vpop.f32.mrb[0].mxu1 }
 0x199   : > { %v10285_v54 = vpop.f32.mrb[1].mxu1 }
 0x19b   : > { %8499 = vmatmul.mubr.f32.vlgmr.msra.gmra.mrb[0].mxu0 %v11375_v61 }
 0x19c   : > { %8501 = vmatprep.mubr.f32.mxu0 %v11377_v41 }
 0x19f   : > { %8502 = vmatmul.mubr.f32.gmra.mrb[2].mxu0 %v11379_v44 }
 0x1a0   : > { %8504 = vmatprep.mubr.f32.mxu0 %v11381_v57 }
 0x1a3   : > { %8505 = vmatmul.mubr.f32.gmra.mrb[4].mxu0 %v11382_v7  ;;  %v2741_v7 = vld [vmem:[#allocation2] sm:$0xff] }
 0x1a4   : > { %8507 = vmatprep.mubr.f32.mxu0 %v11384_v1 }
 0x1a7   : > { %8508 = vmatmul.mubr.f32.gmra.mrb[6].mxu0 %v11385_v34 }
 0x1a8   : > { %8510 = vmatprep.mubr.f32.mxu0 %v11386_v27 }
 0x1ab   : > { %8511 = vmatmul.mubr.f32.gmra.mrb[8].mxu0 %v11388_v43 }
 0x1ac   : > { %8513 = vmatprep.mubr.f32.mxu0 %v11390_v45 }
 0x1af   : > { %8514 = vmatmul.mubr.f32.gmra.mrb[10].mxu0 %v11392_v36 }
 0x1b0   : > { %8516 = vmatprep.mubr.f32.mxu0 %v11394_v20 }
 0x1b3   : > { %8517 = vmatmul.mubr.f32.gmra.mrb[12].mxu0 %v11396_v53 }
 0x1b4   : > { %8519 = vmatprep.mubr.f32.mxu0 %v11397_v52 }
 0x1b7   : > { %8520 = vmatmul.mubr.f32.gmra.mrb[14].mxu0 %v11399_v13 }
 0x1b8   : > { %8522 = vmatprep.mubr.f32.mxu0 %v11401_v5 }
 0x1bb   : > { %8523 = vmatmul.mubr.f32.gmra.mrb[16].mxu0 %v11402_v60 }
 0x1bc   : > { %8525 = vmatprep.mubr.f32.mxu0 %v11403_v31 }
 0x1bf   : > { %8526 = vmatmul.mubr.f32.gmra.mrb[18].mxu0 %v11404_v51 }
 0x1c0   : > { %8528 = vmatprep.mubr.f32.mxu0 %v9936_v62 }
 0x1c3   : > { %8529 = vmatmul.mubr.f32.gmra.mrb[20].mxu0 %v9948_v26 }
 0x1c4   : > { %8531 = vmatprep.mubr.f32.mxu0 %v9954_v35 }
 0x1c7   : > { %8532 = vmatmul.mubr.f32.gmra.mrb[22].mxu0 %v9966_v37  ;;  %v8183_v37 = vpop.f32.mrb[2].mxu1 }
 0x1c8   : > { %8534 = vmatprep.mubr.f32.mxu0 %v9972_v63  ;;  %v698_v26 = vpop.f32.mrb[3].mxu1 }
 0x1c9   : > { %v10303_v62 = vpop.f32.mrb[4].mxu1 }
 0x1cb   : > { %8535 = vmatmul.mubr.f32.gmra.mrb[24].mxu0 %v11376_v4 }
 0x1cc   : > { %8537 = vmatprep.mubr.f32.mxu0 %v11378_v25 }
 0x1cf   : > { %8538 = vmatmul.mubr.f32.gmra.mrb[26].mxu0 %v11380_v16 }
 0x1d0   : > { %8540 = vmatprep.mubr.f32.mxu0 %v10008_v55  ;;  %v11275_v55 = vmov 0.0  }
 0x1d1   : > { %2813 = vmatprep.mubr.f32.mxu1 %v11275_v55 }
 0x1d3   : > { %8541 = vmatmul.mubr.f32.gmra.mrb[28].mxu0 %v11383_v40  ;;  %v2743_v40 = vsel %vm431_vm0, %v2741_v7, 0 }
 0x1d4   : > { %8543 = vmatprep.mubr.f32.mxu0 %v10026_v47  ;;  %v10377_v1 = vand.u32 4294901760, %v2743_v40 }
 0x1d6   : > { %v10380_v34 = vsub.f32 %v2743_v40, %v10377_v1 }
 0x1d7   : > { %8544 = vmatmul.mubr.f32.gmra.mrb[30].mxu0 %v10038_v49  ;;  %v10305_v49 = vpop.f32.mrb[5].mxu1 }
 0x1d8   : > { %8546 = vmatprep.mubr.f32.mxu0 %v11387_v28  ;;  %v10307_v35 = vpop.f32.mrb[6].mxu1 }
 0x1d9   : > { %v10309_v63 = vpop.f32.mrb[7].mxu1 }
 0x1da   : > { %v10312_v47 = vpop.f32.mrb[8].mxu1 }
 0x1db   : > { %8547 = vmatmul.mubr.f32.gmra.mrb[32].mxu0 %v11389_v17  ;;  %v10384_v17 = vand.u32 4294901760, %v10380_v34 }
 0x1dc   : > { %8549 = vmatprep.mubr.f32.mxu0 %v11391_v6 }
 0x1dd   : > { %v2817_v52 = vsub.f32 %v10380_v34, %v10384_v17 }
 0x1df   : > { %8550 = vmatmul.mubr.f32.gmra.mrb[34].mxu0 %v11393_v58 }
 0x1e0   : > { %8552 = vmatprep.mubr.f32.mxu0 %v11395_v50 }
 0x1e3   : > { %8553 = vmatmul.mubr.f32.gmra.mrb[36].mxu0 %v10090_v3  ;;  %v10314_v3 = vpop.f32.mrb[9].mxu1 }
 0x1e4   : > { %8555 = vmatprep.mubr.f32.mxu0 %v11398_v29  ;;  %v10316_v14 = vpop.f32.mrb[10].mxu1 }
 0x1e5   : > { %v10318_v0 = vpop.f32.mrb[11].mxu1 }
 0x1e6   : > { %v10320_v10 = vpop.f32.mrb[12].mxu1 }
 0x1e7   : > { %8556 = vmatmul.mubr.f32.gmra.mrb[38].mxu0 %v11400_v9  ;;  %v10322_v59 = vpop.f32.mrb[13].mxu1 }
 0x1e8   : > { %v10324_v15 = vpop.f32.mrb[14].mxu1 }
 0x1e9   : > { %v10326_v2 = vpop.f32.mrb[15].mxu1 }
 0x1ea   : > { %v10328_v22 = vpop.f32.mrb[16].mxu1 }
 0x1eb   : > { %v10330_v42 = vpop.f32.mrb[17].mxu1 }
 0x1ec   : > { %v10332_v46 = vpop.f32.mrb[18].mxu1 }
 0x1ed   : > { %v10334_v39 = vpop.f32.mrb[19].mxu1 }
 0x211   : > { %v10336_v48 = vpop.f32.mrb[20].mxu1 }
 0x212   : > { %v10338_v24 = vpop.f32.mrb[21].mxu1 }
 0x215   : > { %v10340_v30 = vpop.f32.mrb[22].mxu1 }
 0x216   : > { %v10342_v21 = vpop.f32.mrb[23].mxu1 }
 0x219   : > { %v10344_v56 = vpop.f32.mrb[24].mxu1 }
 0x21a   : > { %v10346_v11 = vpop.f32.mrb[25].mxu1 }
 0x21d   : > { %v10348_v12 = vpop.f32.mrb[26].mxu1 }
 0x21e   : > { %v10350_v19 = vpop.f32.mrb[27].mxu1 }
 0x221   : > { %v10352_v8 = vpop.f32.mrb[28].mxu1 }
 0x222   : > { %v10354_v38 = vpop.f32.mrb[29].mxu1 }
 0x225   : > { %v10356_v32 = vpop.f32.mrb[30].mxu1 }
 0x226   : > { %v10358_v23 = vpop.f32.mrb[31].mxu1 }
 0x229   : > { %v10360_v33 = vpop.f32.mrb[32].mxu1 }
 0x22a   : > { %v10362_v61 = vpop.f32.mrb[33].mxu1 }
 0x22b   : > { %11405 = vst [vmem:[#allocation13_spill] sm:$0xff] %v10362_v61 }
 0x22d   : > { %v10364_v4 = vpop.f32.mrb[34].mxu1 }
 0x22e   : > { %11406 = vst [vmem:[#allocation15_spill] sm:$0xff] %v10364_v4  ;;  %v10366_v41 = vpop.f32.mrb[35].mxu1 }
 0x22f   : > { %11407 = vst [vmem:[#allocation45_spill] sm:$0xff] %v10366_v41 }
 0x231   : > { %v10368_v25 = vpop.f32.mrb[36].mxu1 }
 0x232   : > { %11408 = vst [vmem:[#allocation16_spill] sm:$0xff] %v10368_v25  ;;  %v10370_v44 = vpop.f32.mrb[37].mxu1 }
 0x233   : > { %11409 = vst [vmem:[#allocation46_spill] sm:$0xff] %v10370_v44 }
 0x235   : > { %v10372_v16 = vpop.f32.mrb[38].mxu1 }
 0x236   : > { %11410 = vst [vmem:[#allocation19_spill] sm:$0xff] %v10372_v16  ;;  %v10374_v57 = vpop.f32.mrb[39].mxu1 }
 0x237   : > { %11411 = vst [vmem:[#allocation47_spill] sm:$0xff] %v10374_v57 }
 0x26e   : > { %v8500_v27 = vpop.f32.mrb[0].mxu0 }
 0x26f   : > { %v8824_v28 = vadd.f32 %v8500_v27, %v10282_v18  ;;  %v2503_v43 = vpop.f32.mrb[1].mxu0 }
 0x270   : > { %v8825_v45 = vadd.f32 %v2503_v43, %v10285_v54 }
 0x271   : > { %v2751_v6 = vand.u32 4294901760, %v8824_v28 }
 0x272   : > { %v2747_v36 = vand.u32 4294901760, %v8825_v45  ;;  %v8503_v58 = vpop.f32.mrb[2].mxu0 }
 0x273   : > { %v10387_v20 = vsub.f32 %v8824_v28, %v2751_v6  ;;  %v8826_v50 = vadd.f32 %v8503_v58, %v8183_v37  ;;  %v2515_v53 = vpop.f32.mrb[3].mxu0  ;;  %v10403_v28 = vand.u32 4294901760, %v2817_v52 }
 0x274   : > { %v10391_v29 = vpack.c.bf16 %v2751_v6, %v2747_v36  ;;  %v10393_v13 = vsub.f32 %v8825_v45, %v2747_v36  ;;  %v8827_v9 = vadd.f32 %v2515_v53, %v698_v26 }
 0x275   : > { %v2845_v5 = vand.u32 4294901760, %v10387_v20  ;;  %v2749_v60 = vand.u32 4294901760, %v8826_v50 }
 0x276   : > { %v2833_v31 = vand.u32 4294901760, %v10393_v13  ;;  %v2745_v18 = vand.u32 4294901760, %v8827_v9  ;;  %v8506_v54 = vpop.f32.mrb[4].mxu0 }
 0x277   : > { %v2846_v37 = vsub.f32 %v10387_v20, %v2845_v5  ;;  %v10400_v7 = vsub.f32 %v8826_v50, %v2749_v60  ;;  %v8828_v40 = vadd.f32 %v8506_v54, %v10303_v62  ;;  %v2527_v27 = vpop.f32.mrb[5].mxu0 }
 0x278   : > { %v2834_v26 = vsub.f32 %v10393_v13, %v2833_v31  ;;  %v2826_v43 = vsub.f32 %v8827_v9, %v2745_v18  ;;  %v8829_v45 = vadd.f32 %v2527_v27, %v10305_v49  ;;  %v10407_v6 = vpack.c.bf16 %v2749_v60, %v2745_v18 }
 0x279   : > { %v2847_v36 = vand.u32 4294901760, %v2846_v37  ;;  %v2839_v58 = vand.u32 4294901760, %v10400_v7  ;;  %v3242_v53 = vand.u32 4294901760, %v8828_v40  ;;  %v10410_v51 = vpack.c.bf16 %v2845_v5, %v2833_v31 }
 0x27a   : > { %v2835_v50 = vand.u32 4294901760, %v2834_v26  ;;  %v2827_v55 = vand.u32 4294901760, %v2826_v43  ;;  %v3238_v57 = vand.u32 4294901760, %v8829_v45  ;;  %v8509_v62 = vpop.f32.mrb[6].mxu0  ;;  %8583 = vmatprep.subr.bf16.mxu1 %v10407_v6  ;;  %v8590_v52 = vpack.c.bf16 %v10400_v7, %v2826_v43 }
 0x27b   : > { %v10414_v54 = vsub.f32 %v8828_v40, %v3242_v53  ;;  %v8830_v49 = vadd.f32 %v8509_v62, %v10307_v35  ;;  %v2539_v9 = vpop.f32.mrb[7].mxu0  ;;  %8585 = vmatpush1.bf16.msra.mxu1 %v10391_v29  ;;  %v2840_v60 = vsub.f32 %v10400_v7, %v2839_v58 }
 0x27c   : > { %v10419_v18 = vpack.c.bf16 %v3242_v53, %v3238_v57  ;;  %v10421_v5 = vsub.f32 %v8829_v45, %v3238_v57  ;;  %v8831_v31 = vadd.f32 %v2539_v9, %v10309_v63  ;;  %v2828_v37 = vsub.f32 %v2826_v43, %v2827_v55 }
 0x27d   : > { %11412 = vst [vmem:[#allocation20_spill] sm:$0xff] %v10414_v54  ;;  %v3336_v27 = vand.u32 4294901760, %v10414_v54  ;;  %v3240_v26 = vand.u32 4294901760, %v8830_v49  ;;  %v2841_v16 = vand.u32 4294901760, %v2840_v60  ;;  %v8588_v40 = vpack.c.bf16 %v2847_v36, %v2835_v50 }
 0x27e   : > { %v3324_v44 = vand.u32 4294901760, %v10421_v5  ;;  %v3236_v62 = vand.u32 4294901760, %v8831_v31  ;;  %v8512_v25 = vpop.f32.mrb[8].mxu0  ;;  %2819 = vmatmul.mubr.f32.vlgmr.msra.gmra.mrb[40].mxu1 %v10403_v28  ;;  %v2829_v7 = vand.u32 4294901760, %v2828_v37  ;;  %v11413_v53 = vmov 0.0  }
 0x27f   : > { %v3337_v57 = vsub.f32 %v10414_v54, %v3336_v27  ;;  %v10430_v45 = vsub.f32 %v8830_v49, %v3240_v26  ;;  %v8832_v63 = vadd.f32 %v8512_v25, %v10312_v47  ;;  %v2551_v43 = vpop.f32.mrb[9].mxu0  ;;  %2909 = vmatprep.mubr.f32.mxu1 %v11413_v53  ;;  %v10434_v36 = vpack.c.bf16 %v2839_v58, %v2827_v55 }
 0x280   : > { %v3325_v50 = vsub.f32 %v10421_v5, %v3324_v44  ;;  %v10437_v9 = vsub.f32 %v8831_v31, %v3236_v62  ;;  %v8833_v60 = vadd.f32 %v2551_v43, %v10314_v3  ;;  %v8586_v35 = vpack.c.bf16 %v2841_v16, %v2829_v7 }
 0x281   : > { %v3338_v41 = vand.u32 4294901760, %v3337_v57  ;;  %v3330_v37 = vand.u32 4294901760, %v10430_v45  ;;  %v3733_v54 = vand.u32 4294901760, %v8832_v63  ;;  %v10441_v49 = vpack.c.bf16 %v3240_v26, %v3236_v62 }
 0x282   : > { %v3326_v4 = vand.u32 4294901760, %v3325_v50  ;;  %v3318_v47 = vand.u32 4294901760, %v10437_v9  ;;  %v3729_v25 = vand.u32 4294901760, %v8833_v60  ;;  %v8515_v61 = vpop.f32.mrb[10].mxu0  ;;  %8587 = vmatprep.subr.bf16.mxu1 %v8586_v35  ;;  %v10450_v7 = vpack.c.bf16 %v3336_v27, %v3324_v44 }
 0x283   : > { %v10446_v58 = vsub.f32 %v8832_v63, %v3733_v54  ;;  %v8834_v3 = vadd.f32 %v8515_v61, %v10316_v14  ;;  %v2563_v16 = vpop.f32.mrb[11].mxu0  ;;  %8589 = vmatpush1.bf16.msra.mxu1 %v8588_v40  ;;  %v3331_v31 = vsub.f32 %v10430_v45, %v3330_v37 }
 0x284   : > { %v10452_v26 = vpack.c.bf16 %v3733_v54, %v3729_v25  ;;  %v10454_v62 = vsub.f32 %v8833_v60, %v3729_v25  ;;  %v8835_v57 = vadd.f32 %v2563_v16, %v10318_v0  ;;  %8591 = vmatprep.subr.bf16.mxu1 %v8590_v52  ;;  %v3319_v35 = vsub.f32 %v10437_v9, %v3318_v47 }
 0x285   : > { %v11278_v63 = vand.u32 4294901760, %v10446_v58  ;;  %v3731_v43 = vand.u32 4294901760, %v8834_v3  ;;  %v3332_v50 = vand.u32 4294901760, %v3331_v31  ;;  %v10459_v14 = vpack.c.bf16 %v3338_v41, %v3326_v4 }
 0x286   : > { %v11279_v61 = vand.u32 4294901760, %v10454_v62  ;;  %v3727_v54 = vand.u32 4294901760, %v8835_v57  ;;  %v8518_v27 = vpop.f32.mrb[12].mxu0  ;;  %2911 = vmatmul.mubr.f32.vlgmr.msra.gmra.mrb[40].mxu1 %v10377_v1  ;;  %v3320_v40 = vand.u32 4294901760, %v3319_v35  ;;  %v11415_v41 = vpack.c.bf16 %v10387_v20, %v10393_v13 }
 0x287   : > { %v3828_v0 = vsub.f32 %v10446_v58, %v11278_v63  ;;  %v10468_v52 = vsub.f32 %v8834_v3, %v3731_v43  ;;  %v8836_v60 = vadd.f32 %v8518_v27, %v10320_v10  ;;  %v2575_v4 = vpop.f32.mrb[13].mxu0  ;;  %2989 = vmatprep.mubr.f32.mxu1 %v11413_v53  ;;  %v10485_v20 = vpack.c.bf16 %v3330_v37, %v3318_v47 }
 0x288   : > { %8593 = vmatpush1.bf16.msra.mxu1 %v11415_v41  ;;  %v3816_v25 = vsub.f32 %v10454_v62, %v11279_v61  ;;  %v10478_v16 = vsub.f32 %v8835_v57, %v3727_v54  ;;  %v8837_v31 = vadd.f32 %v2575_v4, %v10322_v59  ;;  %v10482_v3 = vpack.c.bf16 %v3332_v50, %v3320_v40 }
 0x289   : > { %11414 = vst [vmem:[#allocation23_spill] sm:$0xff] %v10468_v52  ;;  %8595 = vmatprep.subr.bf16.mxu1 %v10407_v6  ;;  %v3829_v10 = vand.u32 4294901760, %v3828_v0  ;;  %v3821_v35 = vand.u32 4294901760, %v10468_v52  ;;  %v4224_v27 = vand.u32 4294901760, %v8836_v60  ;;  %v10488_v63 = vpack.c.bf16 %v3731_v43, %v3727_v54 }
 0x28a   : > { %11416 = vst [vmem:[#allocation48_spill] sm:$0xff] %v10478_v16  ;;  %v3817_v13 = vand.u32 4294901760, %v3816_v25  ;;  %v3809_v41 = vand.u32 4294901760, %v10478_v16  ;;  %v4220_v44 = vand.u32 4294901760, %v8837_v31  ;;  %v8521_v55 = vpop.f32.mrb[14].mxu0 }
 0x28b   : > { %v10490_v57 = vsub.f32 %v8836_v60, %v4224_v27  ;;  %v8838_v59 = vadd.f32 %v8521_v55, %v10324_v15  ;;  %v2587_v4 = vpop.f32.mrb[15].mxu0  ;;  %v3822_v50 = vsub.f32 %v10468_v52, %v3821_v35 }
 0x28c   : > { %v10496_v0 = vpack.c.bf16 %v4224_v27, %v4220_v44  ;;  %v10498_v37 = vsub.f32 %v8837_v31, %v4220_v44  ;;  %v8839_v47 = vadd.f32 %v2587_v4, %v10326_v2  ;;  %v3810_v25 = vsub.f32 %v10478_v16, %v3809_v41 }
 0x28d   : > { %v11280_v43 = vand.u32 4294901760, %v10490_v57  ;;  %v4222_v54 = vand.u32 4294901760, %v8838_v59  ;;  %v3823_v60 = vand.u32 4294901760, %v3822_v50  ;;  %v10503_v61 = vpack.c.bf16 %v3829_v10, %v3817_v13 }
 0x28e   : > { %11417 = vst [vmem:[#allocation24_spill] sm:$0xff] %v10496_v0  ;;  %v11284_v15 = vand.u32 4294901760, %v10498_v37  ;;  %v4218_v40 = vand.u32 4294901760, %v8839_v47  ;;  %v8524_v27 = vpop.f32.mrb[16].mxu0  ;;  %2992 = vmatmul.mubr.f32.vlgmr.msra.gmra.mrb[40].mxu1 %v10380_v34  ;;  %v3811_v44 = vand.u32 4294901760, %v3810_v25 }
 0x28f   : > { %11418 = vst [vmem:[#allocation27_spill] sm:$0xff] %v10503_v61  ;;  %v4319_v2 = vsub.f32 %v10490_v57, %v11280_v43  ;;  %v10512_v31 = vsub.f32 %v8838_v59, %v4222_v54  ;;  %v8840_v4 = vadd.f32 %v8524_v27, %v10328_v22  ;;  %8597 = vmatpush1.bf16.msra.mxu1 %v10391_v29  ;;  %v2599_v10 = vpop.f32.mrb[17].mxu0 }
 0x290   : > { %3066 = vmatprep.mubr.f32.mxu1 %v11413_v53  ;;  %v4307_v13 = vsub.f32 %v10498_v37, %v11284_v15  ;;  %v10520_v50 = vsub.f32 %v8839_v47, %v4218_v40  ;;  %v8841_v25 = vadd.f32 %v2599_v10, %v10330_v42  ;;  %8599 = vmatprep.subr.bf16.mxu1 %v10434_v36  ;;  %v11420_v47 = vand.u32 4294901760, %v10454_v62 }
 0x291   : > { %v10524_v55 = vpack.c.bf16 %v3823_v60, %v3811_v44  ;;  %v4320_v59 = vand.u32 4294901760, %v4319_v2  ;;  %v4312_v22 = vand.u32 4294901760, %v10512_v31  ;;  %v4715_v27 = vand.u32 4294901760, %v8840_v4 }
 0x292   : > { %v10527_v43 = vpack.c.bf16 %v3821_v35, %v3809_v41  ;;  %v4308_v0 = vand.u32 4294901760, %v4307_v13  ;;  %v4300_v16 = vand.u32 4294901760, %v10520_v50  ;;  %v4711_v52 = vand.u32 4294901760, %v8841_v25  ;;  %v8527_v61 = vpop.f32.mrb[18].mxu0 }
 0x293   : > { %v11421_v15 = vand.u32 4294901760, %v10446_v58  ;;  %v10536_v36 = vsub.f32 %v8840_v4, %v4715_v27  ;;  %v8842_v60 = vadd.f32 %v8527_v61, %v10332_v46  ;;  %v2611_v44 = vpop.f32.mrb[19].mxu0  ;;  %v10539_v2 = vpack.c.bf16 %v4222_v54, %v4218_v40 }
 0x294   : > { %11419 = vst [vmem:[#allocation28_spill] sm:$0xff] %v10527_v43  ;;  %v4313_v35 = vsub.f32 %v10512_v31, %v4312_v22  ;;  %v10542_v41 = vpack.c.bf16 %v4715_v27, %v4711_v52  ;;  %v10544_v10 = vsub.f32 %v8841_v25, %v4711_v52  ;;  %v8843_v13 = vadd.f32 %v2611_v44, %v10334_v39 }
 0x295   : > { %v10534_v42 = vpack.c.bf16 %v11421_v15, %v11420_v47  ;;  %v4301_v43 = vsub.f32 %v10520_v50, %v4300_v16  ;;  %v11285_v15 = vand.u32 4294901760, %v10536_v36  ;;  %v4713_v47 = vand.u32 4294901760, %v8842_v60 }
 0x296   : > { %11423 = vst [vmem:[#allocation31_spill] sm:$0xff] %v10542_v41  ;;  %v4314_v4 = vand.u32 4294901760, %v4313_v35  ;;  %v11287_v46 = vand.u32 4294901760, %v10544_v10  ;;  %v4709_v40 = vand.u32 4294901760, %v8843_v13  ;;  %v8530_v54 = vpop.f32.mrb[20].mxu0  ;;  %3070 = vmatmul.mubr.f32.vlgmr.msra.gmra.mrb[40].mxu1 %v10384_v17 }
 0x297   : > { %11422 = vst [vmem:[#allocation49_spill] sm:$0xff] %v10534_v42  ;;  %v10549_v42 = vpack.c.bf16 %v4320_v59, %v4308_v0  ;;  %v4302_v52 = vand.u32 4294901760, %v4301_v43  ;;  %v4810_v39 = vsub.f32 %v10536_v36, %v11285_v15  ;;  %v10558_v25 = vsub.f32 %v8842_v60, %v4713_v47  ;;  %8601 = vmatpush1.bf16.msra.mxu1 %v10410_v51  ;;  %v2623_v0 = vpop.f32.mrb[21].mxu0 }
 0x298   : > { %v8844_v27 = vadd.f32 %v8530_v54, %v10336_v48  ;;  %3152 = vmatprep.mubr.f32.mxu1 %v11413_v53  ;;  %v4798_v59 = vsub.f32 %v10544_v10, %v11287_v46  ;;  %v10566_v44 = vsub.f32 %v8843_v13, %v4709_v40  ;;  %v8845_v43 = vadd.f32 %v2623_v0, %v10338_v24 }
 0x299   : > { %11424 = vst [vmem:[#allocation50_spill] sm:$0xff] %v10549_v42  ;;  %8603 = vmatprep.subr.bf16.mxu1 %v10407_v6  ;;  %v10570_v35 = vpack.c.bf16 %v4314_v4, %v4302_v52  ;;  %v4811_v60 = vand.u32 4294901760, %v4810_v39  ;;  %v4803_v48 = vand.u32 4294901760, %v10558_v25  ;;  %v10576_v13 = vpack.c.bf16 %v4312_v22, %v4300_v16 }
 0x29a   : > { %11425 = vst [vmem:[#allocation32_spill] sm:$0xff] %v10566_v44  ;;  %v5206_v54 = vand.u32 4294901760, %v8844_v27  ;;  %v4799_v61 = vand.u32 4294901760, %v4798_v59  ;;  %v4791_v15 = vand.u32 4294901760, %v10566_v44  ;;  %v5202_v41 = vand.u32 4294901760, %v8845_v43  ;;  %v8533_v46 = vpop.f32.mrb[22].mxu0 }
 0x29b   : > { %11426 = vst [vmem:[#allocation51_spill] sm:$0xff] %v10576_v13  ;;  %v8846_v24 = vadd.f32 %v8533_v46, %v10340_v30  ;;  %v2635_v6 = vpop.f32.mrb[23].mxu0  ;;  %v11428_v4 = vand.u32 4294901760, %v10498_v37  ;;  %v11429_v52 = vand.u32 4294901760, %v10490_v57  ;;  %v10587_v0 = vpack.c.bf16 %v4713_v47, %v4709_v40 }
 0x29c   : > { %v10578_v42 = vsub.f32 %v8844_v27, %v5206_v54  ;;  %v10589_v59 = vpack.c.bf16 %v5206_v54, %v5202_v41  ;;  %v10591_v51 = vsub.f32 %v8845_v43, %v5202_v41  ;;  %v8847_v16 = vadd.f32 %v2635_v6, %v10342_v21 }
 0x29d   : > { %v10585_v39 = vpack.c.bf16 %v11429_v52, %v11428_v4  ;;  %11430 = vst [vmem:[#allocation52_spill] sm:$0xff] %v10587_v0  ;;  %v4792_v22 = vsub.f32 %v10566_v44, %v4791_v15  ;;  %v5204_v30 = vand.u32 4294901760, %v8846_v24  ;;  %v4804_v46 = vsub.f32 %v10558_v25, %v4803_v48 }
 0x29e   : > { %11427 = vst [vmem:[#allocation35_spill] sm:$0xff] %v10578_v42  ;;  %11431 = vst [vmem:[#allocation36_spill] sm:$0xff] %v10589_v59  ;;  %v11288_v27 = vand.u32 4294901760, %v10578_v42  ;;  %v10597_v13 = vpack.c.bf16 %v4811_v60, %v4799_v61  ;;  %v11290_v4 = vand.u32 4294901760, %v10591_v51  ;;  %v5200_v40 = vand.u32 4294901760, %v8847_v16  ;;  %v8536_v54 = vpop.f32.mrb[24].mxu0  ;;  %3154 = vmatmul.mubr.f32.vlgmr.msra.gmra.mrb[40].mxu1 %v10377_v1 }
 0x29f   : > { %11432 = vst [vmem:[#allocation53_spill] sm:$0xff] %v10591_v51  ;;  %v4793_v41 = vand.u32 4294901760, %v4792_v22  ;;  %v10606_v43 = vsub.f32 %v8846_v24, %v5204_v30  ;;  %v8848_v6 = vadd.f32 %v8536_v54, %v10344_v56  ;;  %8605 = vmatpush1.bf16.msra.mxu1 %v10391_v29  ;;  %v2647_v61 = vpop.f32.mrb[25].mxu0  ;;  %3228 = vmatprep.mubr.f32.mxu1 %v11413_v53  ;;  %v4805_v60 = vand.u32 4294901760, %v4804_v46 }
 0x2a0   : > { %11433 = vst [vmem:[#allocation38_spill] sm:$0xff] %v10597_v13  ;;  %v5301_v21 = vsub.f32 %v10578_v42, %v11288_v27  ;;  %v5289_v52 = vsub.f32 %v10591_v51, %v11290_v4  ;;  %v10614_v47 = vsub.f32 %v8847_v16, %v5200_v40  ;;  %v8849_v22 = vadd.f32 %v2647_v61, %v10346_v11 }
 0x2a1   : > { %8607 = vmatprep.subr.bf16.mxu1 %v10441_v49  ;;  %v5294_v29 = vand.u32 4294901760, %v10606_v43  ;;  %v5697_v54 = vand.u32 4294901760, %v8848_v6  ;;  %v10621_v27 = vpack.c.bf16 %v4805_v60, %v4793_v41  ;;  %v10624_v16 = vpack.c.bf16 %v4803_v48, %v4791_v15 }
 0x2a2   : > { %v5302_v56 = vand.u32 4294901760, %v5301_v21  ;;  %v5290_v46 = vand.u32 4294901760, %v5289_v52  ;;  %v5282_v59 = vand.u32 4294901760, %v10614_v47  ;;  %v5693_v13 = vand.u32 4294901760, %v8849_v22  ;;  %v8539_v4 = vpop.f32.mrb[26].mxu0 }
 0x2a3   : > { %11434 = vst [vmem:[#allocation39_spill] sm:$0xff] %v10624_v16  ;;  %v10626_v0 = vsub.f32 %v8848_v6, %v5697_v54  ;;  %v8850_v11 = vadd.f32 %v8539_v4, %v10348_v12  ;;  %v2659_v61 = vpop.f32.mrb[27].mxu0  ;;  %v11436_v24 = vand.u32 4294901760, %v10544_v10  ;;  %v11437_v21 = vand.u32 4294901760, %v10536_v36 }
 0x2a4   : > { %v10635_v41 = vpack.c.bf16 %v5204_v30, %v5200_v40  ;;  %v10637_v60 = vpack.c.bf16 %v5697_v54, %v5693_v13  ;;  %v10639_v52 = vsub.f32 %v8849_v22, %v5693_v13  ;;  %v8851_v15 = vadd.f32 %v2659_v61, %v10350_v19 }
 0x2a5   : > { %11435 = vst [vmem:[#allocation54_spill] sm:$0xff] %v10626_v0  ;;  %v10633_v44 = vpack.c.bf16 %v11437_v21, %v11436_v24  ;;  %v5283_v48 = vsub.f32 %v10614_v47, %v5282_v59  ;;  %v11293_v6 = vand.u32 4294901760, %v10626_v0  ;;  %v5695_v12 = vand.u32 4294901760, %v8850_v11 }
 0x2a6   : > { %11438 = vst [vmem:[#allocation40_spill] sm:$0xff] %v10635_v41  ;;  %11439 = vst [vmem:[#allocation55_spill] sm:$0xff] %v10637_v60  ;;  %v5295_v4 = vsub.f32 %v10606_v43, %v5294_v29  ;;  %v10645_v16 = vpack.c.bf16 %v5302_v56, %v5290_v46  ;;  %v11296_v24 = vand.u32 4294901760, %v10639_v52  ;;  %v5691_v40 = vand.u32 4294901760, %v8851_v15  ;;  %v8542_v54 = vpop.f32.mrb[28].mxu0  ;;  %3230 = vmatmul.mubr.f32.vlgmr.msra.gmra.mrb[40].mxu1 %v10377_v1 }
 0x2a7   : > { %11440 = vst [vmem:[#allocation41_spill] sm:$0xff] %v10639_v52  ;;  %v5284_v13 = vand.u32 4294901760, %v5283_v48  ;;  %v5792_v19 = vsub.f32 %v10626_v0, %v11293_v6  ;;  %v10654_v22 = vsub.f32 %v8850_v11, %v5695_v12  ;;  %v8852_v61 = vadd.f32 %v8542_v54, %v10352_v8  ;;  %8609 = vmatpush1.bf16.msra.mxu1 %v10419_v18  ;;  %v2671_v56 = vpop.f32.mrb[29].mxu0 }
 0x2a8   : > { %11441 = vst [vmem:[#allocation42_spill] sm:$0xff] %v10645_v16  ;;  %3304 = vmatprep.mubr.f32.mxu1 %v11413_v53  ;;  %v5296_v46 = vand.u32 4294901760, %v5295_v4  ;;  %v5780_v21 = vsub.f32 %v10639_v52, %v11296_v24  ;;  %v10662_v30 = vsub.f32 %v8851_v15, %v5691_v40  ;;  %v8853_v48 = vadd.f32 %v2671_v56, %v10354_v38 }
 0x2a9   : > { %11442 = vst [vmem:[#allocation43_spill] sm:$0xff] %v10654_v22  ;;  %8611 = vmatprep.subr.bf16.mxu1 %v10482_v3  ;;  %v5793_v8 = vand.u32 4294901760, %v5792_v19  ;;  %v5785_v54 = vand.u32 4294901760, %v10654_v22  ;;  %v6188_v6 = vand.u32 4294901760, %v8852_v61  ;;  %v10673_v15 = vpack.c.bf16 %v5294_v29, %v5282_v59 }
 0x2aa   : > { %11443 = vst [vmem:[#allocation44_spill] sm:$0xff] %v10662_v30  ;;  %v10669_v60 = vpack.c.bf16 %v5296_v46, %v5284_v13  ;;  %v5781_v4 = vand.u32 4294901760, %v5780_v21  ;;  %v5773_v16 = vand.u32 4294901760, %v10662_v30  ;;  %v6184_v41 = vand.u32 4294901760, %v8853_v48  ;;  %v8545_v24 = vpop.f32.mrb[30].mxu0  ;;  %3310 = vmatmul.mubr.f32.vlgmr.msra.gmra.mrb[42].mxu1 %v10403_v28 }
 0x2ab   : > { %11444 = vst [vmem:[#allocation56_spill] sm:$0xff] %v10673_v15  ;;  %v10675_v38 = vsub.f32 %v8852_v61, %v6188_v6  ;;  %v8854_v3 = vadd.f32 %v8545_v24, %v10356_v32  ;;  %8613 = vmatpush1.bf16.msra.mxu1 %v10459_v14  ;;  %v2683_v19 = vpop.f32.mrb[31].mxu0  ;;  %3400 = vmatprep.mubr.f32.mxu1 %v11413_v53  ;;  %v11445_v13 = vand.u32 4294901760, %v10591_v51  ;;  %v11446_v56 = vand.u32 4294901760, %v10578_v42 }
 0x2ac   : > { %v10686_v21 = vpack.c.bf16 %v6188_v6, %v6184_v41  ;;  %v10688_v11 = vsub.f32 %v8853_v48, %v6184_v41  ;;  %v8855_v59 = vadd.f32 %v2683_v19, %v10358_v23  ;;  %v11449_v32 = vpack.c.bf16 %v10430_v45, %v10437_v9  ;;  %v11452_v41 = vld [vmem:[#allocation13_spill] sm:$0xff] }
 0x2ad   : > { %v10684_v46 = vpack.c.bf16 %v11446_v56, %v11445_v13  ;;  %v10694_v14 = vpack.c.bf16 %v5695_v12, %v5691_v40  ;;  %v11299_v29 = vand.u32 4294901760, %v10675_v38  ;;  %v6186_v24 = vand.u32 4294901760, %v8854_v3 }
 0x2ae   : > { %11448 = vst [vmem:[#allocation58_spill] sm:$0xff] %v10686_v21  ;;  %8615 = vmatprep.subr.bf16.mxu1 %v11449_v32  ;;  %v5774_v61 = vsub.f32 %v10662_v30, %v5773_v16  ;;  %v5786_v13 = vsub.f32 %v10654_v22, %v5785_v54  ;;  %v11300_v6 = vand.u32 4294901760, %v10688_v11  ;;  %v6182_v48 = vand.u32 4294901760, %v8855_v59  ;;  %v8548_v23 = vpop.f32.mrb[32].mxu0 }
 0x2af   : > { %11447 = vst [vmem:[#allocation57_spill] sm:$0xff] %v10684_v46  ;;  %11450 = vst [vmem:[#allocation59_spill] sm:$0xff] %v10694_v14  ;;  %v10702_v19 = vpack.c.bf16 %v5793_v8, %v5781_v4  ;;  %v6283_v45 = vsub.f32 %v10675_v38, %v11299_v29  ;;  %v10707_v9 = vsub.f32 %v8854_v3, %v6186_v24  ;;  %v2695_v40 = vpop.f32.mrb[33].mxu0 }
 0x2b0   : > { %v8856_v12 = vadd.f32 %v8548_v23, %v10360_v33  ;;  %v5775_v56 = vand.u32 4294901760, %v5774_v61  ;;  %v6271_v32 = vsub.f32 %v10688_v11, %v11300_v6  ;;  %v10713_v21 = vsub.f32 %v8855_v59, %v6182_v48 }
 0x2b1   : > { %11451 = vst [vmem:[#allocation60_spill] sm:$0xff] %v10702_v19  ;;  %v8857_v14 = vadd.f32 %v2695_v40, %v11452_v41  ;;  %v5787_v8 = vand.u32 4294901760, %v5786_v13  ;;  %v6284_v4 = vand.u32 4294901760, %v6283_v45  ;;  %v6276_v3 = vand.u32 4294901760, %v10707_v9  ;;  %v11455_v41 = vld [vmem:[#allocation15_spill] sm:$0xff]  ;;  %v11456_v45 = vld [vmem:[#allocation20_spill] sm:$0xff] }
 0x2b2   : > { %v6679_v19 = vand.u32 4294901760, %v8856_v12  ;;  %v6264_v33 = vand.u32 4294901760, %v10713_v21  ;;  %v8551_v61 = vpop.f32.mrb[34].mxu0  ;;  %3402 = vmatmul.mubr.f32.vlgmr.msra.gmra.mrb[42].mxu1 %v10377_v1  ;;  %v6272_v59 = vand.u32 4294901760, %v6271_v32  ;;  %v11457_v40 = vpack.c.bf16 %v11456_v45, %v10421_v5 }
 0x2b3   : > { %v6675_v23 = vand.u32 4294901760, %v8857_v14  ;;  %v10721_v46 = vpack.c.bf16 %v5787_v8, %v5775_v56  ;;  %v8858_v13 = vadd.f32 %v8551_v61, %v11455_v41  ;;  %v2707_v29 = vpop.f32.mrb[35].mxu0  ;;  %3480 = vmatprep.mubr.f32.mxu1 %v11413_v53  ;;  %v10730_v30 = vpack.c.bf16 %v5785_v54, %v5773_v16  ;;  %v11461_v56 = vld [vmem:[#allocation45_spill] sm:$0xff] }
 0x2b4   : > { %v10723_v6 = vsub.f32 %v8856_v12, %v6679_v19  ;;  %8617 = vmatpush1.bf16.msra.mxu1 %v11457_v40  ;;  %v8859_v8 = vadd.f32 %v2707_v29, %v11461_v56  ;;  %v11462_v12 = vand.u32 4294901760, %v10639_v52  ;;  %v11463_v32 = vand.u32 4294901760, %v10626_v0 }
 0x2b5   : > { %11453 = vst [vmem:[#allocation13_spill] sm:$0xff] %v10721_v46  ;;  %11458 = vst [vmem:[#allocation15_spill] sm:$0xff] %v10730_v30  ;;  %v10732_v22 = vpack.c.bf16 %v6679_v19, %v6675_v23  ;;  %v10734_v15 = vsub.f32 %v8857_v14, %v6675_v23  ;;  %8619 = vmatprep.subr.bf16.mxu1 %v10441_v49  ;;  %v6677_v41 = vand.u32 4294901760, %v8858_v13 }
 0x2b6   : > { %11454 = vst [vmem:[#allocation61_spill] sm:$0xff] %v10723_v6  ;;  %v10742_v61 = vpack.c.bf16 %v11463_v32, %v11462_v12  ;;  %v6773_v5 = vand.u32 4294901760, %v10723_v6  ;;  %v10745_v45 = vpack.c.bf16 %v6186_v24, %v6182_v48  ;;  %v6265_v16 = vsub.f32 %v10713_v21, %v6264_v33  ;;  %v8554_v19 = vpop.f32.mrb[36].mxu0  ;;  %v11466_v12 = vld [vmem:[#allocation16_spill] sm:$0xff] }
 0x2b7   : > { %11459 = vst [vmem:[#allocation20_spill] sm:$0xff] %v10732_v22  ;;  %11460 = vst [vmem:[#allocation62_spill] sm:$0xff] %v10734_v15  ;;  %v6761_v54 = vand.u32 4294901760, %v10734_v15  ;;  %v6673_v29 = vand.u32 4294901760, %v8859_v8  ;;  %v6277_v23 = vsub.f32 %v10707_v9, %v6276_v3  ;;  %v10753_v56 = vsub.f32 %v8858_v13, %v6677_v41  ;;  %v2719_v22 = vpop.f32.mrb[37].mxu0 }
 0x2b8   : > { %11464 = vst [vmem:[#allocation45_spill] sm:$0xff] %v10742_v61  ;;  %11465 = vst [vmem:[#allocation63_spill] sm:$0xff] %v10745_v45  ;;  %v6774_v40 = vsub.f32 %v10723_v6, %v6773_v5  ;;  %v8860_v32 = vadd.f32 %v8554_v19, %v11466_v12  ;;  %v6266_v24 = vand.u32 4294901760, %v6265_v16  ;;  %v11467_v61 = vld [vmem:[#allocation46_spill] sm:$0xff]  ;;  %v10760_v46 = vpack.c.bf16 %v6284_v4, %v6272_v59  ;;  %v11469_v12 = vld [vmem:[#allocation19_spill] sm:$0xff] }
 0x2b9   : > { %v6762_v48 = vsub.f32 %v10734_v15, %v6761_v54  ;;  %v10757_v45 = vsub.f32 %v8859_v8, %v6673_v29  ;;  %v8861_v30 = vadd.f32 %v2719_v22, %v11467_v61  ;;  %v6278_v52 = vand.u32 4294901760, %v6277_v23 }
 0x2ba   : > { %v6775_v14 = vand.u32 4294901760, %v6774_v40  ;;  %v7170_v0 = vand.u32 4294901760, %v8860_v32  ;;  %v6767_v51 = vand.u32 4294901760, %v10753_v56  ;;  %v8557_v42 = vpop.f32.mrb[38].mxu0  ;;  %3483 = vmatmul.mubr.f32.vlgmr.msra.gmra.mrb[42].mxu1 %v10380_v34  ;;  %v11471_v40 = vld [vmem:[#allocation47_spill] sm:$0xff]  ;;  %v10789_v4 = vpack.c.bf16 %v6677_v41, %v6673_v29 }
 0x2bb   : > { %v6755_v13 = vand.u32 4294901760, %v10757_v45  ;;  %v7166_v6 = vand.u32 4294901760, %v8861_v30  ;;  %v10765_v16 = vpack.c.bf16 %v6278_v52, %v6266_v24  ;;  %v6763_v19 = vand.u32 4294901760, %v6762_v48  ;;  %8621 = vmatpush1.bf16.msra.mxu1 %v10419_v18  ;;  %v2731_v61 = vpop.f32.mrb[39].mxu0  ;;  %3557 = vmatprep.mubr.f32.mxu1 %v11413_v53 }
 0x2bc   : > { %v10767_v8 = vsub.f32 %v8860_v32, %v7170_v0  ;;  %v8862_v22 = vadd.f32 %v8557_v42, %v11469_v12  ;;  %v8863_v52 = vadd.f32 %v2731_v61, %v11471_v40  ;;  %8623 = vmatprep.subr.bf16.mxu1 %v10485_v20  ;;  %v10780_v32 = vpack.c.bf16 %v6276_v3, %v6264_v33 }
 0x2bd   : > { %v10774_v59 = vpack.c.bf16 %v7170_v0, %v7166_v6  ;;  %v10776_v23 = vsub.f32 %v8861_v30, %v7166_v6  ;;  %v11472_v48 = vand.u32 4294901760, %v10688_v11  ;;  %v11473_v12 = vand.u32 4294901760, %v10675_v38  ;;  %11475 = vst [vmem:[#allocation47_spill] sm:$0xff] %v10789_v4 }
 0x2be   : > { %11468 = vst [vmem:[#allocation16_spill] sm:$0xff] %v10767_v8  ;;  %v7264_v42 = vand.u32 4294901760, %v10767_v8  ;;  %v7168_v24 = vand.u32 4294901760, %v8862_v22  ;;  %v7164_v6 = vand.u32 4294901760, %v8863_v52  ;;  %v6756_v20 = vsub.f32 %v10757_v45, %v6755_v13 }
 0x2bf   : > { %11470 = vst [vmem:[#allocation46_spill] sm:$0xff] %v10774_v59  ;;  %v10787_v15 = vpack.c.bf16 %v11473_v12, %v11472_v48  ;;  %v7252_v0 = vand.u32 4294901760, %v10776_v23  ;;  %v6768_v61 = vsub.f32 %v10753_v56, %v6767_v51  ;;  %v10799_v40 = vpack.c.bf16 %v6775_v14, %v6763_v19 }
 0x2c0   : > { %v7265_v3 = vsub.f32 %v10767_v8, %v7264_v42  ;;  %v10796_v33 = vsub.f32 %v8862_v22, %v7168_v24  ;;  %v10802_v41 = vsub.f32 %v8863_v52, %v7164_v6  ;;  %v6757_v29 = vand.u32 4294901760, %v6756_v20 }
 0x2c1   : > { %11474 = vst [vmem:[#allocation19_spill] sm:$0xff] %v10787_v15  ;;  %v7253_v48 = vsub.f32 %v10776_v23, %v7252_v0  ;;  %v8782_v12 = vpack.c.bf16 %v10753_v56, %v10757_v45  ;;  %v6769_v4 = vand.u32 4294901760, %v6768_v61  ;;  %v10807_v15 = vpack.c.bf16 %v6767_v51, %v6755_v13 }
 0x2c2   : > { %v7266_v30 = vand.u32 4294901760, %v7265_v3  ;;  %v7258_v59 = vand.u32 4294901760, %v10796_v33  ;;  %v7246_v8 = vand.u32 4294901760, %v10802_v41  ;;  %3561 = vmatmul.mubr.f32.vlgmr.msra.gmra.mrb[42].mxu1 %v10384_v17  ;;  %v10811_v14 = vpack.c.bf16 %v6773_v5, %v6761_v54 }
 0x2c3   : > { %v7254_v22 = vand.u32 4294901760, %v7253_v48  ;;  %v10813_v19 = vpack.c.bf16 %v7168_v24, %v7164_v6  ;;  %8625 = vmatpush1.bf16.msra.mxu1 %v10450_v7  ;;  %3643 = vmatprep.mubr.f32.mxu1 %v11413_v53  ;;  %v10817_v52 = vpack.c.bf16 %v6769_v4, %v6757_v29  ;;  %v8806_v51 = vpack.c.bf16 %v10796_v33, %v10802_v41  ;;  %v11504_v29 = vld [vmem:[#allocation59_spill] sm:$0xff] }
 0x2c4   : > { %v7259_v20 = vsub.f32 %v10796_v33, %v7258_v59  ;;  %8627 = vmatprep.subr.bf16.mxu1 %v10441_v49  ;;  %v7247_v13 = vsub.f32 %v10802_v41, %v7246_v8  ;;  %v10826_v5 = vpack.c.bf16 %v7258_v59, %v7246_v8  ;;  %v10828_v54 = vpack.c.bf16 %v7264_v42, %v7252_v0  ;;  %v11476_v49 = vld [vmem:[#allocation27_spill] sm:$0xff]  ;;  %v11482_v42 = vld [vmem:[#allocation49_spill] sm:$0xff] }
 0x2c5   : > { %v10824_v3 = vpack.c.bf16 %v7266_v30, %v7254_v22  ;;  %v11477_v8 = vld [vmem:[#allocation23_spill] sm:$0xff]  ;;  %v11480_v59 = vpack.c.bf16 %v10446_v58, %v10454_v62  ;;  %v11483_v58 = vld [vmem:[#allocation24_spill] sm:$0xff]  ;;  %v11484_v62 = vld [vmem:[#allocation50_spill] sm:$0xff] }
 0x2c6   : > { %v7260_v7 = vand.u32 4294901760, %v7259_v20  ;;  %v7248_v24 = vand.u32 4294901760, %v7247_v13  ;;  %v11499_v0 = vld [vmem:[#allocation35_spill] sm:$0xff]  ;;  %v11500_v30 = vld [vmem:[#allocation53_spill] sm:$0xff]  ;;  %v11507_v13 = vld [vmem:[#allocation60_spill] sm:$0xff] }
 0x2c7   : > { %v11501_v61 = vpack.c.bf16 %v11499_v0, %v11500_v30  ;;  %v11505_v22 = vld [vmem:[#allocation55_spill] sm:$0xff]  ;;  %v11506_v20 = vld [vmem:[#allocation13_spill] sm:$0xff]  ;;  %v11526_v30 = vld [vmem:[#allocation46_spill] sm:$0xff] }
 0x2c8   : > { %v10830_v6 = vpack.c.bf16 %v7260_v7, %v7248_v24  ;;  %v11508_v7 = vld [vmem:[#allocation43_spill] sm:$0xff]  ;;  %v11509_v24 = vld [vmem:[#allocation44_spill] sm:$0xff] }
 0x2ca   : > { %3645 = vmatmul.mubr.f32.vlgmr.msra.gmra.mrb[42].mxu1 %v10377_v1 }
 0x2cb   : > { %8629 = vmatpush1.bf16.msra.mxu1 %v10419_v18  ;;  %3719 = vmatprep.mubr.f32.mxu1 %v11413_v53  ;;  %v11478_v18 = vld [vmem:[#allocation48_spill] sm:$0xff] }
 0x2cc   : > { %8631 = vmatprep.subr.bf16.mxu1 %v10488_v63  ;;  %v11479_v4 = vpack.c.bf16 %v11477_v8, %v11478_v18  ;;  %v11511_v8 = vld [vmem:[#allocation54_spill] sm:$0xff]  ;;  %v11512_v18 = vld [vmem:[#allocation41_spill] sm:$0xff] }
 0x2d2   : > { %3721 = vmatmul.mubr.f32.vlgmr.msra.gmra.mrb[42].mxu1 %v10377_v1 }
 0x2d3   : > { %8633 = vmatpush1.bf16.msra.mxu1 %v10452_v26  ;;  %3795 = vmatprep.mubr.f32.mxu1 %v11413_v53 }
 0x2d4   : > { %8635 = vmatprep.subr.bf16.mxu1 %v10524_v55  ;;  %v11481_v55 = vld [vmem:[#allocation28_spill] sm:$0xff] }
 0x2d6   : > { %3801 = vmatmul.mubr.f32.vlgmr.msra.gmra.mrb[44].mxu1 %v10403_v28 }
 0x2d7   : > { %8637 = vmatpush1.bf16.msra.mxu1 %v11476_v49  ;;  %3891 = vmatprep.mubr.f32.mxu1 %v11413_v53  ;;  %v11510_v49 = vpack.c.bf16 %v11508_v7, %v11509_v24 }
 0x2d8   : > { %8639 = vmatprep.subr.bf16.mxu1 %v11479_v4  ;;  %v11513_v4 = vpack.c.bf16 %v11511_v8, %v11512_v18  ;;  %v11533_v18 = vld [vmem:[#allocation26_spill] sm:$0xff] }
 0x2de   : > { %3893 = vmatmul.mubr.f32.vlgmr.msra.gmra.mrb[44].mxu1 %v10377_v1 }
 0x2df   : > { %8641 = vmatpush1.bf16.msra.mxu1 %v11480_v59  ;;  %3971 = vmatprep.mubr.f32.mxu1 %v11413_v53  ;;  %v11514_v59 = vld [vmem:[#allocation15_spill] sm:$0xff] }
 0x2e0   : > { %8643 = vmatprep.subr.bf16.mxu1 %v10488_v63 }
 0x2e6   : > { %3974 = vmatmul.mubr.f32.vlgmr.msra.gmra.mrb[44].mxu1 %v10380_v34 }
 0x2e7   : > { %8645 = vmatpush1.bf16.msra.mxu1 %v10452_v26  ;;  %4048 = vmatprep.mubr.f32.mxu1 %v11413_v53 }
 0x2e8   : > { %8647 = vmatprep.subr.bf16.mxu1 %v11481_v55  ;;  %v11515_v55 = vld [vmem:[#allocation45_spill] sm:$0xff] }
 0x2ee   : > { %4052 = vmatmul.mubr.f32.vlgmr.msra.gmra.mrb[44].mxu1 %v10384_v17 }
 0x2ef   : > { %8649 = vmatpush1.bf16.msra.mxu1 %v11482_v42  ;;  %4134 = vmatprep.mubr.f32.mxu1 %v11413_v53 }
 0x2f0   : > { %8651 = vmatprep.subr.bf16.mxu1 %v10488_v63  ;;  %v11486_v63 = vpack.c.bf16 %v10490_v57, %v10498_v37  ;;  %v11488_v57 = vld [vmem:[#allocation52_spill] sm:$0xff]  ;;  %v11489_v37 = vld [vmem:[#allocation31_spill] sm:$0xff] }
 0x2f6   : > { %4136 = vmatmul.mubr.f32.vlgmr.msra.gmra.mrb[44].mxu1 %v10377_v1 }
 0x2f7   : > { %8653 = vmatpush1.bf16.msra.mxu1 %v10452_v26  ;;  %4210 = vmatprep.mubr.f32.mxu1 %v11413_v53  ;;  %v11485_v26 = vpack.c.bf16 %v10512_v31, %v10520_v50  ;;  %v11490_v31 = vld [vmem:[#allocation38_spill] sm:$0xff]  ;;  %v11491_v50 = vld [vmem:[#allocation32_spill] sm:$0xff] }
 0x2f8   : > { %8655 = vmatprep.subr.bf16.mxu1 %v10539_v2 }
 0x2fe   : > { %4212 = vmatmul.mubr.f32.vlgmr.msra.gmra.mrb[44].mxu1 %v10377_v1 }
 0x2ff   : > { %8657 = vmatpush1.bf16.msra.mxu1 %v11483_v58  ;;  %4286 = vmatprep.mubr.f32.mxu1 %v11413_v53 }
 0x300   : > { %8659 = vmatprep.subr.bf16.mxu1 %v10570_v35  ;;  %v11487_v35 = vld [vmem:[#allocation51_spill] sm:$0xff] }
 0x302   : > { %4292 = vmatmul.mubr.f32.vlgmr.msra.gmra.mrb[46].mxu1 %v10403_v28 }
 0x303   : > { %8661 = vmatpush1.bf16.msra.mxu1 %v11484_v62  ;;  %4382 = vmatprep.mubr.f32.mxu1 %v11413_v53  ;;  %v11516_v62 = vld [vmem:[#allocation63_spill] sm:$0xff] }
 0x304   : > { %8663 = vmatprep.subr.bf16.mxu1 %v11485_v26  ;;  %v11517_v26 = vld [vmem:[#allocation58_spill] sm:$0xff] }
 0x30a   : > { %4384 = vmatmul.mubr.f32.vlgmr.msra.gmra.mrb[46].mxu1 %v10377_v1 }
 0x30b   : > { %8665 = vmatpush1.bf16.msra.mxu1 %v11486_v63  ;;  %4462 = vmatprep.mubr.f32.mxu1 %v11413_v53  ;;  %v11518_v63 = vpack.c.bf16 %v10707_v9, %v10713_v21 }
 0x30c   : > { %8667 = vmatprep.subr.bf16.mxu1 %v10539_v2 }
 0x312   : > { %4465 = vmatmul.mubr.f32.vlgmr.msra.gmra.mrb[46].mxu1 %v10380_v34 }
 0x313   : > { %8669 = vmatpush1.bf16.msra.mxu1 %v11483_v58  ;;  %4539 = vmatprep.mubr.f32.mxu1 %v11413_v53 }
 0x314   : > { %8671 = vmatprep.subr.bf16.mxu1 %v11487_v35  ;;  %v11519_v35 = vpack.c.bf16 %v10675_v38, %v10688_v11 }
 0x31a   : > { %4543 = vmatmul.mubr.f32.vlgmr.msra.gmra.mrb[46].mxu1 %v10384_v17 }
 0x31b   : > { %8673 = vmatpush1.bf16.msra.mxu1 %v10585_v39  ;;  %4625 = vmatprep.mubr.f32.mxu1 %v11413_v53  ;;  %v11493_v39 = vpack.c.bf16 %v10536_v36, %v10544_v10  ;;  %v11495_v36 = vld [vmem:[#allocation40_spill] sm:$0xff] }
 0x31c   : > { %8675 = vmatprep.subr.bf16.mxu1 %v10539_v2  ;;  %v11492_v2 = vpack.c.bf16 %v10558_v25, %v11491_v50  ;;  %v11496_v10 = vld [vmem:[#allocation36_spill] sm:$0xff]  ;;  %v11497_v25 = vld [vmem:[#allocation42_spill] sm:$0xff]  ;;  %v11521_v50 = vld [vmem:[#allocation47_spill] sm:$0xff] }
 0x322   : > { %4627 = vmatmul.mubr.f32.vlgmr.msra.gmra.mrb[46].mxu1 %v10377_v1 }
 0x323   : > { %8677 = vmatpush1.bf16.msra.mxu1 %v11483_v58  ;;  %4701 = vmatprep.mubr.f32.mxu1 %v11413_v53 }
 0x324   : > { %8679 = vmatprep.subr.bf16.mxu1 %v11488_v57 }
 0x32a   : > { %4703 = vmatmul.mubr.f32.vlgmr.msra.gmra.mrb[46].mxu1 %v10377_v1 }
 0x32b   : > { %8681 = vmatpush1.bf16.msra.mxu1 %v11489_v37  ;;  %4777 = vmatprep.mubr.f32.mxu1 %v11413_v53 }
 0x32c   : > { %8683 = vmatprep.subr.bf16.mxu1 %v10621_v27  ;;  %v11494_v27 = vld [vmem:[#allocation39_spill] sm:$0xff] }
 0x32e   : > { %4783 = vmatmul.mubr.f32.vlgmr.msra.gmra.mrb[48].mxu1 %v10403_v28 }
 0x32f   : > { %8685 = vmatpush1.bf16.msra.mxu1 %v11490_v31  ;;  %4873 = vmatprep.mubr.f32.mxu1 %v11413_v53 }
 0x330   : > { %8687 = vmatprep.subr.bf16.mxu1 %v11492_v2 }
 0x336   : > { %4875 = vmatmul.mubr.f32.vlgmr.msra.gmra.mrb[48].mxu1 %v10377_v1 }
 0x337   : > { %8689 = vmatpush1.bf16.msra.mxu1 %v11493_v39  ;;  %4953 = vmatprep.mubr.f32.mxu1 %v11413_v53  ;;  %v11522_v39 = vld [vmem:[#allocation20_spill] sm:$0xff] }
 0x338   : > { %8691 = vmatprep.subr.bf16.mxu1 %v11488_v57 }
 0x33e   : > { %4956 = vmatmul.mubr.f32.vlgmr.msra.gmra.mrb[48].mxu1 %v10380_v34 }
 0x33f   : > { %8693 = vmatpush1.bf16.msra.mxu1 %v11489_v37  ;;  %5030 = vmatprep.mubr.f32.mxu1 %v11413_v53 }
 0x340   : > { %8695 = vmatprep.subr.bf16.mxu1 %v11494_v27  ;;  %v11523_v27 = vld [vmem:[#allocation61_spill] sm:$0xff] }
 0x346   : > { %5034 = vmatmul.mubr.f32.vlgmr.msra.gmra.mrb[48].mxu1 %v10384_v17 }
 0x347   : > { %8697 = vmatpush1.bf16.msra.mxu1 %v10633_v44  ;;  %5116 = vmatprep.mubr.f32.mxu1 %v11413_v53  ;;  %v11498_v44 = vpack.c.bf16 %v10606_v43, %v10614_v47  ;;  %v11503_v47 = vld [vmem:[#allocation57_spill] sm:$0xff] }
 0x348   : > { %8699 = vmatprep.subr.bf16.mxu1 %v11488_v57 }
 0x34e   : > { %5118 = vmatmul.mubr.f32.vlgmr.msra.gmra.mrb[48].mxu1 %v10377_v1 }
 0x34f   : > { %8701 = vmatpush1.bf16.msra.mxu1 %v11489_v37  ;;  %5192 = vmatprep.mubr.f32.mxu1 %v11413_v53 }
 0x350   : > { %8703 = vmatprep.subr.bf16.mxu1 %v11495_v36 }
 0x356   : > { %5194 = vmatmul.mubr.f32.vlgmr.msra.gmra.mrb[48].mxu1 %v10377_v1 }
 0x357   : > { %8705 = vmatpush1.bf16.msra.mxu1 %v11496_v10  ;;  %5268 = vmatprep.mubr.f32.mxu1 %v11413_v53 }
 0x358   : > { %8707 = vmatprep.subr.bf16.mxu1 %v10669_v60  ;;  %v11502_v60 = vld [vmem:[#allocation56_spill] sm:$0xff] }
 0x35a   : > { %5274 = vmatmul.mubr.f32.vlgmr.msra.gmra.mrb[50].mxu1 %v10403_v28 }
 0x35b   : > { %8709 = vmatpush1.bf16.msra.mxu1 %v11497_v25  ;;  %5364 = vmatprep.mubr.f32.mxu1 %v11413_v53 }
 0x35c   : > { %8711 = vmatprep.subr.bf16.mxu1 %v11498_v44 }
 0x362   : > { %5366 = vmatmul.mubr.f32.vlgmr.msra.gmra.mrb[50].mxu1 %v10377_v1 }
 0x363   : > { %8713 = vmatpush1.bf16.msra.mxu1 %v11501_v61  ;;  %5444 = vmatprep.mubr.f32.mxu1 %v11413_v53  ;;  %v11527_v61 = vld [vmem:[#allocation16_spill] sm:$0xff] }
 0x364   : > { %8715 = vmatprep.subr.bf16.mxu1 %v11495_v36 }
 0x36a   : > { %5447 = vmatmul.mubr.f32.vlgmr.msra.gmra.mrb[50].mxu1 %v10380_v34 }
 0x36b   : > { %8717 = vmatpush1.bf16.msra.mxu1 %v11496_v10  ;;  %5521 = vmatprep.mubr.f32.mxu1 %v11413_v53 }
 0x36c   : > { %8719 = vmatprep.subr.bf16.mxu1 %v11502_v60  ;;  %v11528_v60 = vpack.c.bf16 %v11527_v61, %v10776_v23 }
 0x372   : > { %5525 = vmatmul.mubr.f32.vlgmr.msra.gmra.mrb[50].mxu1 %v10384_v17 }
 0x373   : > { %8721 = vmatpush1.bf16.msra.mxu1 %v11503_v47  ;;  %5607 = vmatprep.mubr.f32.mxu1 %v11413_v53 }
 0x374   : > { %8723 = vmatprep.subr.bf16.mxu1 %v11495_v36  ;;  %v11524_v36 = vld [vmem:[#allocation62_spill] sm:$0xff] }
 0x379   : > { %v3231_v43 = vpop.f32.mrb[40].mxu1 }
 0x37a   : > { %v3233_v48 = vpop.f32.mrb[41].mxu1  ;;  %5609 = vmatmul.mubr.f32.vlgmr.msra.gmra.mrb[50].mxu1 %v10377_v1  ;;  %v11004_v38 = vmul.f32 %v3231_v43, %v3231_v43 }
 0x37b   : > { %8725 = vmatpush1.bf16.msra.mxu1 %v11496_v10  ;;  %5683 = vmatprep.mubr.f32.mxu1 %v11413_v53  ;;  %v11011_v57 = vmul.f32 %v3233_v48, %v3233_v48  ;;  %v11525_v10 = vpack.c.bf16 %v11523_v27, %v11524_v36  ;;  %v11541_v27 = vld [vmem:[#allocation34_spill] sm:$0xff] }
 0x37c   : > { %8727 = vmatprep.subr.bf16.mxu1 %v11504_v29  ;;  %v11542_v36 = vld [vmem:[#allocation18_spill] sm:$0xff] }
 0x382   : > { %5685 = vmatmul.mubr.f32.vlgmr.msra.gmra.mrb[50].mxu1 %v10377_v1 }
 0x383   : > { %8729 = vmatpush1.bf16.msra.mxu1 %v11505_v22  ;;  %5759 = vmatprep.mubr.f32.mxu1 %v11413_v53 }
 0x384   : > { %8731 = vmatprep.subr.bf16.mxu1 %v11506_v20  ;;  %v11531_v20 = vld [vmem:[#allocation25_spill] sm:$0xff] }
 0x386   : > { %5765 = vmatmul.mubr.f32.vlgmr.msra.gmra.mrb[52].mxu1 %v10403_v28 }
 0x387   : > { %8733 = vmatpush1.bf16.msra.mxu1 %v11507_v13  ;;  %5855 = vmatprep.mubr.f32.mxu1 %v11413_v53  ;;  %v11532_v13 = vld [vmem:[#allocation10_spill] sm:$0xff] }
 0x388   : > { %8735 = vmatprep.subr.bf16.mxu1 %v11510_v49  ;;  %v416_v7 = vsub.f32 %v11532_v13, %v11531_v20 }
 0x38e   : > { %5857 = vmatmul.mubr.f32.vlgmr.msra.gmra.mrb[52].mxu1 %v10377_v1 }
 0x38f   : > { %8737 = vmatpush1.bf16.msra.mxu1 %v11513_v4  ;;  %5935 = vmatprep.mubr.f32.mxu1 %v11413_v53  ;;  %v11534_v4 = vld [vmem:[#allocation11_spill] sm:$0xff] }
 0x390   : > { %8739 = vmatprep.subr.bf16.mxu1 %v11504_v29 }
 0x396   : > { %5938 = vmatmul.mubr.f32.vlgmr.msra.gmra.mrb[52].mxu1 %v10380_v34 }
 0x397   : > { %8741 = vmatpush1.bf16.msra.mxu1 %v11505_v22  ;;  %6012 = vmatprep.mubr.f32.mxu1 %v11413_v53 }
 0x398   : > { %8743 = vmatprep.subr.bf16.mxu1 %v11514_v59  ;;  %v417_v59 = vsub.f32 %v11534_v4, %v11533_v18 }
 0x39e   : > { %6016 = vmatmul.mubr.f32.vlgmr.msra.gmra.mrb[52].mxu1 %v10384_v17 }
 0x39f   : > { %8745 = vmatpush1.bf16.msra.mxu1 %v11515_v55  ;;  %6098 = vmatprep.mubr.f32.mxu1 %v11413_v53 }
 0x3a0   : > { %8747 = vmatprep.subr.bf16.mxu1 %v11504_v29 }
 0x3a5   : > { %v10972_v42 = vpop.f32.mrb[42].mxu1 }
 0x3a6   : > { %v10974_v58 = vpop.f32.mrb[43].mxu1  ;;  %6100 = vmatmul.mubr.f32.vlgmr.msra.gmra.mrb[52].mxu1 %v10377_v1  ;;  %v11054_v56 = vmul.f32 %v10972_v42, %v10972_v42 }
 0x3a7   : > { %8749 = vmatpush1.bf16.msra.mxu1 %v11505_v22  ;;  %6174 = vmatprep.mubr.f32.mxu1 %v11413_v53  ;;  %v11530_v22 = vld [vmem:[#allocation9_spill] sm:$0xff] }
 0x3a8   : > { %8751 = vmatprep.subr.bf16.mxu1 %v11516_v62 }
 0x3ae   : > { %6176 = vmatmul.mubr.f32.vlgmr.msra.gmra.mrb[52].mxu1 %v10377_v1 }
 0x3af   : > { %8753 = vmatpush1.bf16.msra.mxu1 %v11517_v26  ;;  %6250 = vmatprep.mubr.f32.mxu1 %v11413_v53 }
 0x3b0   : > { %8755 = vmatprep.subr.bf16.mxu1 %v10765_v16 }
 0x3b2   : > { %6256 = vmatmul.mubr.f32.vlgmr.msra.gmra.mrb[54].mxu1 %v10403_v28 }
 0x3b3   : > { %8757 = vmatpush1.bf16.msra.mxu1 %v10760_v46  ;;  %6346 = vmatprep.mubr.f32.mxu1 %v11413_v53  ;;  %v11520_v46 = vld [vmem:[#allocation19_spill] sm:$0xff] }
 0x3b4   : > { %8759 = vmatprep.subr.bf16.mxu1 %v11518_v63 }
 0x3ba   : > { %6348 = vmatmul.mubr.f32.vlgmr.msra.gmra.mrb[54].mxu1 %v10377_v1 }
 0x3bb   : > { %8761 = vmatpush1.bf16.msra.mxu1 %v11519_v35  ;;  %6426 = vmatprep.mubr.f32.mxu1 %v11413_v53  ;;  %v425_v35 = vmul.f32 %v417_v59, %v417_v59 }
 0x3bc   : > { %8763 = vmatprep.subr.bf16.mxu1 %v11516_v62 }
 0x3c2   : > { %6429 = vmatmul.mubr.f32.vlgmr.msra.gmra.mrb[54].mxu1 %v10380_v34 }
 0x3c3   : > { %8765 = vmatpush1.bf16.msra.mxu1 %v11517_v26  ;;  %6503 = vmatprep.mubr.f32.mxu1 %v11413_v53 }
 0x3c4   : > { %8767 = vmatprep.subr.bf16.mxu1 %v10780_v32 }
 0x3ca   : > { %6507 = vmatmul.mubr.f32.vlgmr.msra.gmra.mrb[54].mxu1 %v10384_v17 }
 0x3cb   : > { %8769 = vmatpush1.bf16.msra.mxu1 %v11520_v46  ;;  %6589 = vmatprep.mubr.f32.mxu1 %v11413_v53 }
 0x3cc   : > { %8771 = vmatprep.subr.bf16.mxu1 %v11516_v62  ;;  %v11535_v62 = vld [vmem:[#allocation29_spill] sm:$0xff] }
 0x3d1   : > { %v4213_v11 = vpop.f32.mrb[44].mxu1 }
 0x3d2   : > { %v11006_v21 = vmul.f32 %v4213_v11, %v4213_v11  ;;  %v11008_v9 = vmul.f32 %v4213_v11, %v3231_v43  ;;  %v4215_v16 = vpop.f32.mrb[45].mxu1  ;;  %6591 = vmatmul.mubr.f32.vlgmr.msra.gmra.mrb[54].mxu1 %v10377_v1 }
 0x3d3   : > { %v11013_v32 = vmul.f32 %v4215_v16, %v4215_v16  ;;  %v11015_v37 = vmul.f32 %v4215_v16, %v3233_v48  ;;  %8773 = vmatpush1.bf16.msra.mxu1 %v11517_v26  ;;  %6665 = vmatprep.mubr.f32.mxu1 %v11413_v53  ;;  %v11536_v26 = vld [vmem:[#allocation12_spill] sm:$0xff] }
 0x3d4   : > { %v11021_v31 = vadd.f32 %v11006_v21, %v11004_v38  ;;  %8775 = vmatprep.subr.bf16.mxu1 %v11521_v50  ;;  %v418_v63 = vsub.f32 %v11536_v26, %v11535_v62  ;;  %v7679_v59 = vmul.f32 2.0, %v11008_v9 }
 0x3d5   : > { %v11026_v2 = vadd.f32 %v11013_v32, %v11011_v57 }
 0x3d6   : > { %v7703_v48 = vadd.f32 0.0001, %v11021_v31  ;;  %v435_v31 = vsel %vm431_vm0, %v425_v35, 0.0 }
 0x3d7   : > { %v7704_v24 = vadd.f32 0.0001, %v11026_v2  ;;  %v11540_v2 = vld [vmem:[#allocation17_spill] sm:$0xff] }
 0x3da   : > { %6667 = vmatmul.mubr.f32.vlgmr.msra.gmra.mrb[54].mxu1 %v10377_v1 }
 0x3db   : > { %8777 = vmatpush1.bf16.msra.mxu1 %v11522_v39  ;;  %6741 = vmatprep.mubr.f32.mxu1 %v11413_v53 }
 0x3dc   : > { %8779 = vmatprep.subr.bf16.mxu1 %v10817_v52 }
 0x3de   : > { %6747 = vmatmul.mubr.f32.vlgmr.msra.gmra.mrb[56].mxu1 %v10403_v28 }
 0x3df   : > { %8781 = vmatpush1.bf16.msra.mxu1 %v10799_v40  ;;  %6837 = vmatprep.mubr.f32.mxu1 %v11413_v53 }
 0x3e0   : > { %8783 = vmatprep.subr.bf16.mxu1 %v8782_v12 }
 0x3e6   : > { %6839 = vmatmul.mubr.f32.vlgmr.msra.gmra.mrb[56].mxu1 %v10377_v1 }
 0x3e7   : > { %8785 = vmatpush1.bf16.msra.mxu1 %v11525_v10  ;;  %6917 = vmatprep.mubr.f32.mxu1 %v11413_v53  ;;  %v421_v10 = vsub.f32 %v11542_v36, %v11541_v27 }
 0x3e8   : > { %8787 = vmatprep.subr.bf16.mxu1 %v11521_v50 }
 0x3ee   : > { %6920 = vmatmul.mubr.f32.vlgmr.msra.gmra.mrb[56].mxu1 %v10380_v34 }
 0x3ef   : > { %8789 = vmatpush1.bf16.msra.mxu1 %v11522_v39  ;;  %6994 = vmatprep.mubr.f32.mxu1 %v11413_v53 }
 0x3f0   : > { %8791 = vmatprep.subr.bf16.mxu1 %v10807_v15  ;;  %v11064_v15 = vmul.f32 %v10974_v58, %v10974_v58 }
 0x3f6   : > { %6998 = vmatmul.mubr.f32.vlgmr.msra.gmra.mrb[56].mxu1 %v10384_v17 }
 0x3f7   : > { %8793 = vmatpush1.bf16.msra.mxu1 %v10811_v14  ;;  %7080 = vmatprep.mubr.f32.mxu1 %v11413_v53 }
 0x3f8   : > { %8795 = vmatprep.subr.bf16.mxu1 %v11521_v50  ;;  %v11539_v50 = vld [vmem:[#allocation33_spill] sm:$0xff] }
 0x3fd   : > { %v4704_v45 = vpop.f32.mrb[46].mxu1 }
 0x3fe   : > { %v11056_v40 = vmul.f32 %v4704_v45, %v4704_v45  ;;  %v11059_v12 = vmul.f32 %v4704_v45, %v10972_v42  ;;  %v4706_v52 = vpop.f32.mrb[47].mxu1  ;;  %7082 = vmatmul.mubr.f32.vlgmr.msra.gmra.mrb[56].mxu1 %v10377_v1  ;;  %v424_v42 = vmul.f32 %v416_v7, %v416_v7  ;;  %v11543_v45 = vld [vmem:[#allocation37_spill] sm:$0xff] }
 0x3ff   : > { %v11066_v14 = vmul.f32 %v4706_v52, %v4706_v52  ;;  %v11069_v25 = vmul.f32 %v4706_v52, %v10974_v58  ;;  %8797 = vmatpush1.bf16.msra.mxu1 %v11522_v39  ;;  %7156 = vmatprep.mubr.f32.mxu1 %v11413_v53  ;;  %v420_v39 = vsub.f32 %v11540_v2, %v11539_v50 }
 0x400   : > { %v11075_v44 = vadd.f32 %v11056_v40, %v11054_v56  ;;  %8799 = vmatprep.subr.bf16.mxu1 %v10813_v19  ;;  %v433_v11 = vsel %vm431_vm0, %v424_v42, 0.0  ;;  %v7683_v42 = vadd.f32 0.0001, %v7679_v59 }
 0x401   : > { %v11080_v0 = vadd.f32 %v11066_v14, %v11064_v15  ;;  %v7682_v50 = vmul.f32 2.0, %v11069_v25 }
 0x402   : > { %v7705_v20 = vadd.f32 0.0001, %v11075_v44 }
 0x403   : > { %v7706_v7 = vadd.f32 0.0001, %v11080_v0 }
 0x406   : > { %7158 = vmatmul.mubr.f32.vlgmr.msra.gmra.mrb[56].mxu1 %v10377_v1 }
 0x407   : > { %8801 = vmatpush1.bf16.msra.mxu1 %v11526_v30  ;;  %7232 = vmatprep.mubr.f32.mxu1 %v11413_v53 }
 0x408   : > { %8803 = vmatprep.subr.bf16.mxu1 %v10830_v6 }
 0x40a   : > { %7238 = vmatmul.mubr.f32.vlgmr.msra.gmra.mrb[58].mxu1 %v10403_v28 }
 0x40b   : > { %8805 = vmatpush1.bf16.msra.mxu1 %v10824_v3  ;;  %7328 = vmatprep.mubr.f32.mxu1 %v11413_v53 }
 0x40c   : > { %8807 = vmatprep.subr.bf16.mxu1 %v8806_v51 }
 0x412   : > { %7330 = vmatmul.mubr.f32.vlgmr.msra.gmra.mrb[58].mxu1 %v10377_v1 }
 0x413   : > { %8809 = vmatpush1.bf16.msra.mxu1 %v11528_v60  ;;  %7408 = vmatprep.mubr.f32.mxu1 %v11413_v53  ;;  %v428_v60 = vmul.f32 %v420_v39, %v420_v39 }
 0x414   : > { %8811 = vmatprep.subr.bf16.mxu1 %v10813_v19 }
 0x41a   : > { %7411 = vmatmul.mubr.f32.vlgmr.msra.gmra.mrb[58].mxu1 %v10380_v34 }
 0x41b   : > { %8813 = vmatpush1.bf16.msra.mxu1 %v11526_v30  ;;  %7485 = vmatprep.mubr.f32.mxu1 %v11413_v53 }
 0x41c   : > { %8815 = vmatprep.subr.bf16.mxu1 %v10826_v5 }
 0x422   : > { %7489 = vmatmul.mubr.f32.vlgmr.msra.gmra.mrb[58].mxu1 %v10384_v17 }
 0x423   : > { %8817 = vmatpush1.bf16.msra.mxu1 %v10828_v54  ;;  %7571 = vmatprep.mubr.f32.mxu1 %v11413_v53 }
 0x424   : > { %8819 = vmatprep.subr.bf16.mxu1 %v10813_v19 }
 0x429   : > { %v5195_v28 = vpop.f32.mrb[48].mxu1 }
 0x42a   : > { %v7667_v23 = vsub.f32 %v5195_v28, %v11004_v38  ;;  %v5197_v33 = vpop.f32.mrb[49].mxu1  ;;  %7573 = vmatmul.mubr.f32.vlgmr.msra.gmra.mrb[58].mxu1 %v10377_v1  ;;  %v11537_v38 = vld [vmem:[#allocation30_spill] sm:$0xff]  ;;  %v429_v28 = vmul.f32 %v421_v10, %v421_v10 }
 0x42b   : > { %v7668_v34 = vsub.f32 %v5197_v33, %v11011_v57  ;;  %8821 = vmatpush1.bf16.msra.mxu1 %v11526_v30  ;;  %7647 = vmatprep.mubr.f32.mxu1 %v11413_v53  ;;  %v11529_v53 = vld [vmem:[#allocation22_spill] sm:$0xff]  ;;  %v426_v57 = vmul.f32 %v418_v63, %v418_v63 }
 0x42d   : > { %v437_v61 = vsel %vm431_vm0, %v426_v57, 0.0  ;;  %v7681_v57 = vmul.f32 2.0, %v11059_v12 }
 0x42f   : > { %v7685_v36 = vadd.f32 0.0001, %v7681_v57 }
 0x432   : > { %7649 = vmatmul.mubr.f32.vlgmr.msra.gmra.mrb[58].mxu1 %v10377_v1  ;;  %v415_v1 = vsub.f32 %v11530_v22, %v11529_v53 }
 0x434   : > { %v423_v55 = vmul.f32 %v415_v1, %v415_v1 }
 0x436   : > { %v432_v46 = vsel %vm431_vm0, %v423_v55, 0.0 }
 0x455   : > { %v5686_v17 = vpop.f32.mrb[50].mxu1 }
 0x456   : > { %v7669_v41 = vsub.f32 %v5686_v17, %v11054_v56  ;;  %v5688_v51 = vpop.f32.mrb[51].mxu1  ;;  %v11544_v56 = vld [vmem:[#allocation21_spill] sm:$0xff]  ;;  %v441_v17 = vsel %vm431_vm0, %v428_v60, 0.0 }
 0x457   : > { %v7670_v19 = vsub.f32 %v5688_v51, %v11064_v15  ;;  %v422_v52 = vsub.f32 %v11544_v56, %v11543_v45  ;;  %v7686_v45 = vadd.f32 0.0001, %v7682_v50 }
 0x481   : > { %v6177_v3 = vpop.f32.mrb[52].mxu1 }
 0x482   : > { %v7671_v5 = vsub.f32 %v6177_v3, %v11006_v21  ;;  %v6179_v54 = vpop.f32.mrb[53].mxu1  ;;  %v11538_v21 = vld [vmem:[#allocation14_spill] sm:$0xff]  ;;  %v443_v3 = vsel %vm431_vm0, %v429_v28, 0.0 }
 0x483   : > { %v7672_v6 = vsub.f32 %v6179_v54, %v11013_v32  ;;  %v419_v16 = vsub.f32 %v11538_v21, %v11537_v38  ;;  %v434_v32 = vadd.f32 %v433_v11, %v432_v46 }
 0x484   : > { %v7707_v47 = vadd.f32 %v7671_v5, %v7667_v23 }
 0x485   : > { %v7708_v43 = vadd.f32 %v7672_v6, %v7668_v34  ;;  %v427_v15 = vmul.f32 %v419_v16, %v419_v16  ;;  %v436_v30 = vadd.f32 %v435_v31, %v434_v32  ;;  %v430_v34 = vmul.f32 %v422_v52, %v422_v52 }
 0x486   : > { %v7711_v29 = vadd.f32 0.0009, %v7707_v47 }
 0x487   : > { %v7712_v49 = vadd.f32 0.0009, %v7708_v43  ;;  %v439_v23 = vsel %vm431_vm0, %v427_v15, 0.0  ;;  %v438_v33 = vadd.f32 %v437_v61, %v436_v30  ;;  %v445_v54 = vsel %vm431_vm0, %v430_v34, 0.0 }
 0x488   : > { %v7715_v8 = vmul.f32 %v7711_v29, %v7703_v48 }
 0x489   : > { %v7716_v58 = vmul.f32 %v7712_v49, %v7704_v24  ;;  %v440_v51 = vadd.f32 %v439_v23, %v438_v33 }
 0x48a   : > { %9202 = vrcp.f32 %v7715_v8 }
 0x48b   : > { %v442_v5 = vadd.f32 %v441_v17, %v440_v51  ;;  %9204 = vrcp.f32 %v7716_v58  ;;  %v7727_v58 = vld [vmem:[%s11185_s2] sm:$0xff] }
 0x48d   : > { %v444_v6 = vadd.f32 %v443_v3, %v442_v5 }
 0x48f   : > { %v446_v47 = vadd.f32 %v445_v54, %v444_v6 }
 0x491   : > { %447 = vadd.xlane.f32.xlu0 %v446_v47 }
 0x494   : > { %v9203_v35 = vpop.eup %9202 }
 0x495   : > { %v9205_v46 = vpop.eup %9204 }
 0x4ad   : > { %v6668_v43 = vpop.f32.mrb[54].mxu1 }
 0x4ae   : > { %v7673_v48 = vsub.f32 %v6668_v43, %v11056_v40  ;;  %v6670_v29 = vpop.f32.mrb[55].mxu1 }
 0x4af   : > { %v7674_v53 = vsub.f32 %v6670_v29, %v11066_v14  ;;  %v7680_v14 = vmul.f32 2.0, %v11015_v37 }
 0x4b0   : > { %v7709_v22 = vadd.f32 %v7673_v48, %v7669_v41 }
 0x4b1   : > { %v7710_v1 = vadd.f32 %v7674_v53, %v7670_v19  ;;  %v7684_v0 = vadd.f32 0.0001, %v7680_v14 }
 0x4b2   : > { %v7713_v13 = vadd.f32 0.0009, %v7709_v22 }
 0x4b3   : > { %v7714_v24 = vadd.f32 0.0009, %v7710_v1 }
 0x4b4   : > { %v7717_v49 = vmul.f32 %v7713_v13, %v7705_v20 }
 0x4b5   : > { %v7718_v18 = vmul.f32 %v7714_v24, %v7706_v7 }
 0x4b6   : > { %9206 = vrcp.f32 %v7717_v49 }
 0x4b7   : > { %9208 = vrcp.f32 %v7718_v18 }
 0x4c0   : > { %v9207_v15 = vpop.eup %9206 }
 0x4c1   : > { %v9209_v61 = vpop.eup %9208 }
 0x4d9   : > { %v7159_v4 = vpop.f32.mrb[56].mxu1 }
 0x4da   : > { %v7675_v40 = vsub.f32 %v7159_v4, %v11008_v9  ;;  %v7161_v55 = vpop.f32.mrb[57].mxu1 }
 0x4db   : > { %v7676_v41 = vsub.f32 %v7161_v55, %v11015_v37 }
 0x4dc   : > { %v7687_v19 = vmul.f32 2.0, %v7675_v40 }
 0x4dd   : > { %v7688_v44 = vmul.f32 2.0, %v7676_v41 }
 0x4de   : > { %v7691_v62 = vadd.f32 0.0009, %v7687_v19 }
 0x4df   : > { %v7692_v26 = vadd.f32 0.0009, %v7688_v44 }
 0x4e0   : > { %v7695_v63 = vmul.f32 %v7691_v62, %v7683_v42 }
 0x4e1   : > { %v7696_v8 = vmul.f32 %v7692_v26, %v7684_v0 }
 0x4e2   : > { %v7720_v9 = vmul.f32 %v9203_v35, %v7695_v63 }
 0x4e3   : > { %v7722_v11 = vmul.f32 %v9205_v46, %v7696_v8 }
 0x4e4   : > { %v7728_v38 = vmul.f32 %v7727_v58, %v7720_v9 }
 0x4e5   : > { %v7729_v21 = vmul.f32 %v7727_v58, %v7722_v11 }
 0x4e7   : > { %v7732_v16 = vadd.f32 %v7729_v21, %v7728_v38 }
 0x505   : > { %v7650_v37 = vpop.f32.mrb[58].mxu1 }
 0x506   : > { %v7677_v32 = vsub.f32 %v7650_v37, %v11059_v12  ;;  %v7652_v31 = vpop.f32.mrb[59].mxu1 }
 0x507   : > { %v7678_v2 = vsub.f32 %v7652_v31, %v11069_v25 }
 0x508   : > { %v7689_v39 = vmul.f32 2.0, %v7677_v32 }
 0x509   : > { %v7690_v27 = vmul.f32 2.0, %v7678_v2 }
 0x50a   : > { %v7693_v10 = vadd.f32 0.0009, %v7689_v39 }
 0x50b   : > { %v7694_v56 = vadd.f32 0.0009, %v7690_v27 }
 0x50c   : > { %v7697_v52 = vmul.f32 %v7693_v10, %v7685_v36 }
 0x50d   : > { %v7698_v30 = vmul.f32 %v7694_v56, %v7686_v45 }
 0x50e   : > { %v7724_v60 = vmul.f32 %v9207_v15, %v7697_v52 }
 0x50f   : > { %v7726_v28 = vmul.f32 %v9209_v61, %v7698_v30 }
 0x510   : > { %v7730_v12 = vmul.f32 %v7727_v58, %v7724_v60 }
 0x511   : > { %v7731_v23 = vmul.f32 %v7727_v58, %v7726_v28 }
 0x512   : > { %v7733_v33 = vadd.f32 %v7732_v16, %v7730_v12 }
 0x514   : > { %v7734_v34 = vadd.f32 %v7733_v33, %v7731_v23 }
 0x516   : > { %7735 = vadd.xlane.f32.xlu0 %v7734_v34 }
 0x51e   : > { %v448_v25 = vpop.xlane.xlu0 %447 }
 0x51f   : > { %v449_v17 = vrot.slane %v448_v25, 4 }
 0x521   : > { %v450_v51 = vadd.f32 %v449_v17, %v448_v25 }
 0x523   : > { %v451_v3 = vrot.slane %v450_v51, 2 }
 0x525   : > { %v452_v5 = vadd.f32 %v451_v3, %v450_v51 }
 0x527   : > { %v453_v54 = vrot.slane %v452_v5, 1 }
 0x529   : > { %v454_v6 = vadd.f32 %v453_v54, %v452_v5 }
 0x52b   : > { %9124 = vpush %v454_v6 }
 0x55c   : > { %s9125_s18 = spop %9124 }
 0x55d   : > { %s458_s20 = smul.f32 0.0009765625, %s9125_s18 }
 0x55f   : > { %v7747_v47 = vstv %s458_s20 }
 0x560   : > { %7749 = vst [vmem:[%s360_s30] sm:$0x1] %v7747_v47 }
 0x5a3   : > { %v7736_v43 = vpop.xlane.xlu0 %7735 }
 0x5a4   : > { %v7737_v48 = vrot.slane %v7736_v43, 4 }
 0x5a6   : > { %v7738_v29 = vadd.f32 %v7737_v48, %v7736_v43 }
 0x5a8   : > { %v7739_v53 = vrot.slane %v7738_v29, 2 }
 0x5aa   : > { %v7740_v22 = vadd.f32 %v7739_v53, %v7738_v29 }
 0x5ac   : > { %v7741_v1 = vrot.slane %v7740_v22, 1 }
 0x5ae   : > { %v7742_v20 = vadd.f32 %v7741_v1, %v7740_v22 }
 0x5b0   : > { %9126 = vpush %v7742_v20 }
 0x5e1   : > { %s9127_s11 = spop %9126 }
 0x5e2   : > { %s7746_s13 = smul.f32 0.0069444445, %s9127_s11 }
 0x5e4   : > { %v7750_v13 = vstv %s7746_s13 }
 0x5e5   : > { %7752 = vst [vmem:[%s366_s14] sm:$0x1] %v7750_v13 }
 0x5e6 PF: > { %s21_s26 = sadd.s32 1, %s9352_s26   ;;  %s11545_s21 = smov %s9336_s22 }
 0x5e7   : > { %p18_p9 = scmp.ge.s32.totalorder %s21_s26, 4   ;;  %s11546_s22 = smov %s9340_s23 }
 0x5e8   : > { %s11547_s23 = smov %s9439_s9  ;;  %s11548_s24 = smov %s9348_s25 }
 0x5e9   : > { %s11549_s25 = smov %s11551_s27  ;;  %20 = sbr.rel (!%p18_p9) target bundleno = 5 (0x5), region = 108 }
 0x5f0   :  { %7794 = vsyncpa [#allocation3], 1 }
 0x5f1   :  { %7796 = vsyncpa [#allocation3 + $0x1], 1 }
 0x5f2   :  { %7797 = vsyncpa [#allocation5], 1 }
 0x5f3   :  { %7799 = vsyncpa [#allocation5 + $0x1], 1 }

</bundles_post_ra>
